<compile_context>
chip_gen: v6e
topology: v6e:2x2x1
jax: 0.10.0
libtpu: 0.0.40
codegen_flags: <defaults>
</compile_context>

<pallas_src>
import jax
import jax.numpy as jnp
from jax import lax
from jax.experimental import pallas as pl
from jax.experimental.pallas import tpu as pltpu


_VMEM_LIMIT = 32 * 1024 * 1024  # raise scoped VMEM on v5e; default on v6e/v7x


def _round_up(x, m):
    return ((x + m - 1) // m) * m


# --------------------------------------------------------------------------- #
# Kernel 1: HBM embedding row-gather -> encoder_hidden -> tree convolution ->
#           segment sum over node_indices -> tanh -> per-tree attention pool.
# Grid: chunks of `block_n` windowed nodes; (n_pad, dim) VMEM accumulator.
# --------------------------------------------------------------------------- #
def _encode_pool_kernel(
    # scalar prefetch (SMEM)
    type_idx_ref, token_idx_ref,
    # inputs
    emb_type_hbm, emb_token_hbm,            # HBM (pl.ANY), gathered manually
    node_row_ref,                           # (1, block_n) int32
    eta_t_ref, eta_l_ref, eta_r_ref,        # (block_n, 1) f32
    enc_w_ref,                              # (2*dim, dim) bf16
    enc_b_ref,                              # (1, dim) f32
    w_stack_ref,                            # (3*dim, dim) bf16 [W_t^T; W_l^T; W_r^T]
    bias_conv_ref,                          # (1, 1) f32
    alpha_ref,                              # (dim, 1) f32
    tree_col_ref,                           # (n_pad, 1) int32
    tree_row_ref,                           # (1, n_pad) int32
    # output
    code_ref,                               # (t_pad, dim) f32
    # scratch
    acc_ref, type_buf, token_buf, sem,
):
    f32 = jnp.float32
    bf16 = jnp.bfloat16
    bn = type_buf.shape[0]
    n_pad = acc_ref.shape[0]
    t_pad = code_ref.shape[0]
    c = pl.program_id(0)
    base = c * bn

    # ---- real gather: one row DMA per node from each embedding table ----
    @pl.loop(0, bn)
    def _start(r):
        pltpu.make_async_copy(emb_type_hbm.at[type_idx_ref[base + r]],
                              type_buf.at[r], sem.at[0]).start()
        pltpu.make_async_copy(emb_token_hbm.at[token_idx_ref[base + r]],
                              token_buf.at[r], sem.at[1]).start()

    @pl.when(c == 0)
    def _():
        acc_ref[...] = jnp.zeros_like(acc_ref)

    @pl.loop(0, bn)
    def _wait(r):
        pltpu.make_async_copy(emb_type_hbm.at[0], type_buf.at[r], sem.at[0]).wait()
        pltpu.make_async_copy(emb_token_hbm.at[0], token_buf.at[r], sem.at[1]).wait()

    # ---- encoder_hidden(cat(type_emb, token_emb)): single K=2*dim matmul ----
    cat = jnp.concatenate([type_buf[...], token_buf[...]], axis=1)        # (bn, 2d)
    hidden = (jnp.dot(cat.astype(bf16), enc_w_ref[...],
                      preferred_element_type=f32) + enc_b_ref[...])       # (bn, d)

    # ---- tree conv: eta folded into activations, single K=3*dim matmul ----
    scaled = jnp.concatenate([eta_t_ref[...] * hidden,
                              eta_l_ref[...] * hidden,
                              eta_r_ref[...] * hidden], axis=1)           # (bn, 3d)
    conv_h = jnp.dot(scaled.astype(bf16), w_stack_ref[...],
                     preferred_element_type=f32)                          # (bn, d)

    # ---- scatter_add over node_indices for this chunk (one-hot segment matmul) --
    node_oh = (lax.broadcasted_iota(jnp.int32, (n_pad, bn), 0)
               == node_row_ref[...]).astype(f32)                          # (n_pad, bn)
    acc_ref[...] += jnp.dot(node_oh, conv_h, preferred_element_type=f32)  # (n_pad, d)

    # ---- last chunk: tanh + scatter_softmax attention pooling per tree ----
    @pl.when(c == pl.num_programs(0) - 1)
    def _():
        conv_emb = jnp.tanh(acc_ref[...] + bias_conv_ref[...])            # (n_pad, d)
        inter = jnp.dot(conv_emb, alpha_ref[...],
                        preferred_element_type=f32)                       # (n_pad, 1)
        tree_oh = (lax.broadcasted_iota(jnp.int32, (n_pad, t_pad), 1)
                   == tree_col_ref[...]).astype(f32)                      # (n_pad, t_pad)
        tree_oh_t = (lax.broadcasted_iota(jnp.int32, (t_pad, n_pad), 0)
                     == tree_row_ref[...]).astype(f32)                    # (t_pad, n_pad)
        masked = jnp.where(tree_oh > 0, inter, jnp.float32(-1e30))        # (n_pad, t_pad)
        seg_max = jnp.max(masked, axis=0, keepdims=True)                  # (1, t_pad)
        pe_max = jnp.sum(tree_oh * seg_max, axis=1, keepdims=True)        # (n_pad, 1)
        ex = jnp.exp(inter - pe_max)                                      # (n_pad, 1)
        seg_sum = jnp.sum(tree_oh * ex, axis=0, keepdims=True)            # (1, t_pad)
        pe_sum = jnp.sum(tree_oh * seg_sum, axis=1, keepdims=True)        # (n_pad, 1)
        alpha_i = ex / pe_sum                                             # (n_pad, 1)
        weighted = conv_emb * alpha_i                                     # (n_pad, d)
        code_ref[...] = jnp.dot(tree_oh_t, weighted,
                                preferred_element_type=f32)               # (t_pad, d)


# --------------------------------------------------------------------------- #
# Kernel 2: code_to_subtrees linear, tiled over the subtree vocabulary.
# --------------------------------------------------------------------------- #
def _subtree_proj_kernel(code_ref, w_ref, b_ref, out_ref):
    out_ref[...] = (jnp.dot(code_ref[...].astype(jnp.bfloat16), w_ref[...],
                            preferred_element_type=jnp.float32) + b_ref[...])


def prepare_params(params, *, block_ts=128):
    """One-time (model-build) prep: transpose / stack / pad / bf16-cast weights."""
    dim = params["alpha"].shape[0]
    subtree_size = params["out_w"].shape[0]
    subtree_pad = _round_up(subtree_size, block_ts)
    out_w_t = jnp.zeros((dim, subtree_pad), jnp.bfloat16)
    out_w_t = out_w_t.at[:, :subtree_size].set(params["out_w"].T.astype(jnp.bfloat16))
    out_b = jnp.zeros((1, subtree_pad), jnp.float32)
    out_b = out_b.at[:, :subtree_size].set(params["out_b"].reshape(1, subtree_size))
    return {
        "dim": dim,
        "subtree_size": subtree_size,
        "block_ts": block_ts,
        "emb_type": params["emb_type"].astype(jnp.float32),
        "emb_token": params["emb_token"].astype(jnp.float32),
        "enc_w_t": params["enc_w"].T.astype(jnp.bfloat16),                # (2d, d)
        "enc_b": params["enc_b"].reshape(1, dim).astype(jnp.float32),
        "w_stack": jnp.concatenate(
            [params["w_t"].T, params["w_l"].T, params["w_r"].T],
            axis=0).astype(jnp.bfloat16),                                 # (3d, d)
        "bias_conv": params["bias_conv"].reshape(1, 1).astype(jnp.float32),
        "alpha": params["alpha"].reshape(dim, 1).astype(jnp.float32),
        "out_w_t": out_w_t,                                               # (d, S_pad)
        "out_b": out_b,                                                   # (1, S_pad)
    }


def infercode_forward(prepped, type_batch, token_batch, node_indices,
                      eta_t, eta_l, eta_r, tree_indices,
                      *, num_nodes, num_trees, block_n=128):
    dim = prepped["dim"]
    block_ts = prepped["block_ts"]
    subtree_size = prepped["subtree_size"]
    subtree_pad = prepped["out_w_t"].shape[1]

    N = type_batch.shape[0]
    n = num_nodes
    T = num_trees
    n_pad = _round_up(n, 8)
    t_pad = _round_up(T + 1, 8)          # +1 dummy tree slot absorbs padded nodes
    N_pad = _round_up(N, block_n)

    def pad_to(x, length, value=0):
        return jnp.pad(x, (0, length - x.shape[0]), constant_values=value)

    type_idx = pad_to(type_batch.astype(jnp.int32), N_pad)
    token_idx = pad_to(token_batch.astype(jnp.int32), N_pad)
    node_row = pad_to(node_indices.astype(jnp.int32), N_pad).reshape(1, N_pad)
    eta_t_c = pad_to(eta_t.astype(jnp.float32), N_pad).reshape(N_pad, 1)
    eta_l_c = pad_to(eta_l.astype(jnp.float32), N_pad).reshape(N_pad, 1)
    eta_r_c = pad_to(eta_r.astype(jnp.float32), N_pad).reshape(N_pad, 1)
    tree_col = pad_to(tree_indices.astype(jnp.int32), n_pad, value=T).reshape(n_pad, 1)
    tree_row = tree_col.reshape(1, n_pad)

    num_chunks = N_pad // block_n
    const = lambda c, *_: (0, 0)

    grid_spec = pltpu.PrefetchScalarGridSpec(
        num_scalar_prefetch=2,
        grid=(num_chunks,),
        in_specs=[
            pl.BlockSpec(memory_space=pl.ANY),                       # emb_type (HBM)
            pl.BlockSpec(memory_space=pl.ANY),                       # emb_token (HBM)
            pl.BlockSpec((1, block_n), lambda c, *_: (0, c)),        # node_row
            pl.BlockSpec((block_n, 1), lambda c, *_: (c, 0)),        # eta_t
            pl.BlockSpec((block_n, 1), lambda c, *_: (c, 0)),        # eta_l
            pl.BlockSpec((block_n, 1), lambda c, *_: (c, 0)),        # eta_r
            pl.BlockSpec((2 * dim, dim), const),                     # enc_w_t
            pl.BlockSpec((1, dim), const),                           # enc_b
            pl.BlockSpec((3 * dim, dim), const),                     # w_stack
            pl.BlockSpec((1, 1), const),                             # bias_conv
            pl.BlockSpec((dim, 1), const),                           # alpha
            pl.BlockSpec((n_pad, 1), const),                         # tree_col
            pl.BlockSpec((1, n_pad), const),                         # tree_row
        ],
        out_specs=pl.BlockSpec((t_pad, dim), const),
        scratch_shapes=[
            pltpu.VMEM((n_pad, dim), jnp.float32),     # segment-sum accumulator
            pltpu.VMEM((block_n, dim), jnp.float32),   # gathered type rows
            pltpu.VMEM((block_n, dim), jnp.float32),   # gathered token rows
            pltpu.SemaphoreType.DMA((2,)),
        ],
    )
    code = pl.pallas_call(
        _encode_pool_kernel,
        out_shape=jax.ShapeDtypeStruct((t_pad, dim), jnp.float32),
        grid_spec=grid_spec,
        compiler_params=pltpu.CompilerParams(
            dimension_semantics=("arbitrary",),        # sequential accumulation
            vmem_limit_bytes=_VMEM_LIMIT),
    )(type_idx, token_idx,
      prepped["emb_type"], prepped["emb_token"],
      node_row, eta_t_c, eta_l_c, eta_r_c,
      prepped["enc_w_t"], prepped["enc_b"], prepped["w_stack"],
      prepped["bias_conv"], prepped["alpha"],
      tree_col, tree_row)

    # ---- code_to_subtrees projection, tiled over the subtree vocabulary ----
    logits_pad = pl.pallas_call(
        _subtree_proj_kernel,
        out_shape=jax.ShapeDtypeStruct((t_pad, subtree_pad), jnp.float32),
        grid=(subtree_pad // block_ts,),
        in_specs=[
            pl.BlockSpec((t_pad, dim), lambda j: (0, 0)),
            pl.BlockSpec((dim, block_ts), lambda j: (0, j)),
            pl.BlockSpec((1, block_ts), lambda j: (0, j)),
        ],
        out_specs=pl.BlockSpec((t_pad, block_ts), lambda j: (0, j)),
        compiler_params=pltpu.CompilerParams(
            dimension_semantics=("parallel",),         # shards across 2 TCs on v7x
            vmem_limit_bytes=_VMEM_LIMIT),
    )(code, prepped["out_w_t"], prepped["out_b"])

    return logits_pad[:T, :subtree_size]


def infercode_ref(params, type_batch, token_batch, node_indices,
                  eta_t, eta_l, eta_r, tree_indices, *, num_nodes, num_trees):
    """Pure-JAX f32 reference mirroring the PyTorch forward."""
    type_emb = params["emb_type"][type_batch]
    token_emb = params["emb_token"][token_batch]
    cat = jnp.concatenate([type_emb, token_emb], axis=1)
    hidden = cat @ params["enc_w"].T + params["enc_b"]
    conv = (eta_t[:, None] * (hidden @ params["w_t"].T)
            + eta_l[:, None] * (hidden @ params["w_l"].T)
            + eta_r[:, None] * (hidden @ params["w_r"].T))
    pre = jax.ops.segment_sum(conv, node_indices, num_segments=num_nodes) + params["bias_conv"]
    conv_emb = jnp.tanh(pre)
    inter = conv_emb @ params["alpha"]
    seg_max = jax.ops.segment_max(inter, tree_indices, num_segments=num_trees)
    ex = jnp.exp(inter - seg_max[tree_indices])
    seg_sum = jax.ops.segment_sum(ex, tree_indices, num_segments=num_trees)
    alpha_i = ex / seg_sum[tree_indices]
    weighted = conv_emb * alpha_i[:, None]
    code_vectors = jax.ops.segment_sum(weighted, tree_indices, num_segments=num_trees)
    return code_vectors @ params["out_w"].T + params["out_b"]


if __name__ == "__main__":
    dim = 128
    type_size, token_size, subtree_size = 24, 40, 320
    N, n, T = 200, 24, 3   # windowed nodes, tree nodes, trees (batch size)

    key = jax.random.PRNGKey(0)
    ks = jax.random.split(key, 18)
    b_enc = 1.0 / (2 * dim) ** 0.5
    b_out = 1.0 / dim ** 0.5
    params = {
        "emb_type":  jax.random.normal(ks[0], (type_size, dim), jnp.float32),
        "emb_token": jax.random.normal(ks[1], (token_size, dim), jnp.float32),
        "enc_w": jax.random.uniform(ks[2], (dim, 2 * dim), jnp.float32, -b_enc, b_enc),
        "enc_b": jax.random.uniform(ks[3], (dim,), jnp.float32, -b_enc, b_enc),
        "w_t": jax.random.uniform(ks[4], (dim, dim), jnp.float32),
        "w_l": jax.random.uniform(ks[5], (dim, dim), jnp.float32),
        "w_r": jax.random.uniform(ks[6], (dim, dim), jnp.float32),
        "bias_conv": jax.random.uniform(ks[7], (1,), jnp.float32),
        "alpha": jax.random.uniform(ks[8], (dim,), jnp.float32),
        "out_w": jax.random.uniform(ks[9], (subtree_size, dim), jnp.float32, -b_out, b_out),
        "out_b": jax.random.uniform(ks[10], (subtree_size,), jnp.float32, -b_out, b_out),
    }

    type_batch = jax.random.randint(ks[11], (N,), 0, type_size)
    token_batch = jax.random.randint(ks[12], (N,), 0, token_size)
    node_indices = jax.random.randint(ks[13], (N,), 0, n)
    tree_indices = jnp.repeat(jnp.arange(T, dtype=jnp.int32), n // T)   # (n,)
    eta_t = jax.random.uniform(ks[14], (N,), jnp.float32)
    eta_l = jax.random.uniform(ks[15], (N,), jnp.float32)
    eta_r = jax.random.uniform(ks[16], (N,), jnp.float32)

    prepped = prepare_params(params, block_ts=128)   # build-time weight prep
    logits = infercode_forward(prepped, type_batch, token_batch, node_indices,
                               eta_t, eta_l, eta_r, tree_indices,
                               num_nodes=n, num_trees=T, block_n=128)
    logits = jax.block_until_ready(logits)
    assert logits.shape == (T, subtree_size)

    ref = infercode_ref(params, type_batch, token_batch, node_indices,
                        eta_t, eta_l, eta_r, tree_indices,
                        num_nodes=n, num_trees=T)
    ref = jax.block_until_ready(ref)
    max_err = float(jnp.max(jnp.abs(logits - ref)))
    # bf16 weights/activations on the MXU (f32 accumulation) vs the pure-f32
    # reference: expect O(1e-2) absolute deviation at these magnitudes.
    assert max_err < 1.5e-1, f"kernel/reference mismatch: max abs err {max_err}"

    print("KERNEL_OK")
</pallas_src>

<mosaic_0001>
module attributes {stable_mosaic.version = 11 : i64} {
  func.func @_encode_pool_kernel(%arg0: i32, %arg1: memref<256xi32, #tpu.memory_space<smem>>, %arg2: memref<256xi32, #tpu.memory_space<smem>>, %arg3: memref<24x128xf32, #tpu.memory_space<any>>, %arg4: memref<40x128xf32, #tpu.memory_space<any>>, %arg5: memref<1x128xi32, #tpu.memory_space<vmem>>, %arg6: memref<128x1xf32, #tpu.memory_space<vmem>>, %arg7: memref<128x1xf32, #tpu.memory_space<vmem>>, %arg8: memref<128x1xf32, #tpu.memory_space<vmem>>, %arg9: memref<256x128xbf16, #tpu.memory_space<vmem>>, %arg10: memref<1x128xf32, #tpu.memory_space<vmem>>, %arg11: memref<384x128xbf16, #tpu.memory_space<vmem>>, %arg12: memref<1x1xf32, #tpu.memory_space<vmem>>, %arg13: memref<128x1xf32, #tpu.memory_space<vmem>>, %arg14: memref<24x1xi32, #tpu.memory_space<vmem>>, %arg15: memref<1x24xi32, #tpu.memory_space<vmem>>, %arg16: memref<8x128xf32, #tpu.memory_space<vmem>>, %arg17: memref<24x128xf32, #tpu.memory_space<vmem>>, %arg18: memref<128x128xf32, #tpu.memory_space<vmem>>, %arg19: memref<128x128xf32, #tpu.memory_space<vmem>>, %arg20: memref<2x!tpu.dma_semaphore, #tpu.memory_space<semaphore_mem>>) attributes {dimension_semantics = [#tpu.dimension_semantics<arbitrary>], iteration_bounds = array<i64: 2>, scalar_prefetch = 2 : i64, scratch_operands = 4 : i64, tpu.core_type = #tpu.core_type<tc>, window_params = [{}, {}, {transform_indices = @transform_2, window_bounds = array<i64: 1, 128>}, {transform_indices = @transform_3, window_bounds = array<i64: 128, 1>}, {transform_indices = @transform_4, window_bounds = array<i64: 128, 1>}, {transform_indices = @transform_5, window_bounds = array<i64: 128, 1>}, {pipeline_mode = #tpu.pipeline_mode<synchronous>, transform_indices = @transform_6, window_bounds = array<i64: 256, 128>}, {pipeline_mode = #tpu.pipeline_mode<synchronous>, transform_indices = @transform_7, window_bounds = array<i64: 1, 128>}, {pipeline_mode = #tpu.pipeline_mode<synchronous>, transform_indices = @transform_8, window_bounds = array<i64: 384, 128>}, {pipeline_mode = #tpu.pipeline_mode<synchronous>, transform_indices = @transform_9, window_bounds = array<i64: 1, 1>}, {pipeline_mode = #tpu.pipeline_mode<synchronous>, transform_indices = @transform_10, window_bounds = array<i64: 128, 1>}, {pipeline_mode = #tpu.pipeline_mode<synchronous>, transform_indices = @transform_11, window_bounds = array<i64: 24, 1>}, {pipeline_mode = #tpu.pipeline_mode<synchronous>, transform_indices = @transform_12, window_bounds = array<i64: 1, 24>}, {pipeline_mode = #tpu.pipeline_mode<synchronous>, transform_indices = @transform_13, window_bounds = array<i64: 8, 128>}]} {
    %c128_i32 = arith.constant 128 : i32
    %0 = arith.muli %arg0, %c128_i32 : i32
    %c0_i32 = arith.constant 0 : i32
    %c128_i32_0 = arith.constant 128 : i32
    %1 = arith.addi %c0_i32, %c128_i32_0 : i32
    %c1_i32 = arith.constant 1 : i32
    scf.for %arg21 = %c0_i32 to %1 step %c1_i32  : i32 {
      %c1_i32_33 = arith.constant 1 : i32
      %41 = arith.muli %arg21, %c1_i32_33 : i32
      %c0_i32_34 = arith.constant 0 : i32
      %42 = arith.addi %c0_i32_34, %41 : i32
      %43 = arith.addi %0, %42 : i32
      %44 = arith.index_cast %43 : i32 to index
      %45 = memref.load %arg1[%44] : memref<256xi32, #tpu.memory_space<smem>>
      %c0_i32_35 = arith.constant 0 : i32
      %c0_i32_36 = arith.constant 0 : i32
      %46 = tpu.memref_slice %arg3[%45, %c0_i32_36] : memref<24x128xf32, #tpu.memory_space<any>> -> memref<1x128xf32, #tpu.memory_space<any>>
      %47 = tpu.memref_squeeze %46 : memref<1x128xf32, #tpu.memory_space<any>> -> memref<128xf32, #tpu.memory_space<any>>
      %c0_i32_37 = arith.constant 0 : i32
      %48 = tpu.memref_slice %arg18[%42, %c0_i32_37] : memref<128x128xf32, #tpu.memory_space<vmem>> -> memref<1x128xf32, #tpu.memory_space<vmem>>
      %49 = tpu.memref_squeeze %48 : memref<1x128xf32, #tpu.memory_space<vmem>> -> memref<128xf32, #tpu.memory_space<vmem>>
      %50 = tpu.memref_slice %arg20[%c0_i32_35] : memref<2x!tpu.dma_semaphore, #tpu.memory_space<semaphore_mem>> -> memref<1x!tpu.dma_semaphore, #tpu.memory_space<semaphore_mem>>
      %51 = tpu.memref_squeeze %50 : memref<1x!tpu.dma_semaphore, #tpu.memory_space<semaphore_mem>> -> memref<!tpu.dma_semaphore, #tpu.memory_space<semaphore_mem>>
      tpu.enqueue_dma source(%47 : memref<128xf32, #tpu.memory_space<any>>) target(%49 : memref<128xf32, #tpu.memory_space<vmem>>) target_semaphore(%51 : memref<!tpu.dma_semaphore, #tpu.memory_space<semaphore_mem>>)
      %52 = arith.addi %0, %42 : i32
      %53 = arith.index_cast %52 : i32 to index
      %54 = memref.load %arg2[%53] : memref<256xi32, #tpu.memory_space<smem>>
      %c1_i32_38 = arith.constant 1 : i32
      %c0_i32_39 = arith.constant 0 : i32
      %55 = tpu.memref_slice %arg4[%54, %c0_i32_39] : memref<40x128xf32, #tpu.memory_space<any>> -> memref<1x128xf32, #tpu.memory_space<any>>
      %56 = tpu.memref_squeeze %55 : memref<1x128xf32, #tpu.memory_space<any>> -> memref<128xf32, #tpu.memory_space<any>>
      %c0_i32_40 = arith.constant 0 : i32
      %57 = tpu.memref_slice %arg19[%42, %c0_i32_40] : memref<128x128xf32, #tpu.memory_space<vmem>> -> memref<1x128xf32, #tpu.memory_space<vmem>>
      %58 = tpu.memref_squeeze %57 : memref<1x128xf32, #tpu.memory_space<vmem>> -> memref<128xf32, #tpu.memory_space<vmem>>
      %59 = tpu.memref_slice %arg20[%c1_i32_38] : memref<2x!tpu.dma_semaphore, #tpu.memory_space<semaphore_mem>> -> memref<1x!tpu.dma_semaphore, #tpu.memory_space<semaphore_mem>>
      %60 = tpu.memref_squeeze %59 : memref<1x!tpu.dma_semaphore, #tpu.memory_space<semaphore_mem>> -> memref<!tpu.dma_semaphore, #tpu.memory_space<semaphore_mem>>
      tpu.enqueue_dma source(%56 : memref<128xf32, #tpu.memory_space<any>>) target(%58 : memref<128xf32, #tpu.memory_space<vmem>>) target_semaphore(%60 : memref<!tpu.dma_semaphore, #tpu.memory_space<semaphore_mem>>)
    }
    %c128_i32_1 = arith.constant 128 : i32
    %c0_i32_2 = arith.constant 0 : i32
    %2 = arith.cmpi eq, %arg0, %c0_i32_2 : i32
    %3 = arith.extui %2 : i1 to i32
    %c0_i32_3 = arith.constant 0 : i32
    %4 = arith.cmpi ne, %3, %c0_i32_3 : i32
    scf.if %4 {
      %cst_33 = arith.constant 0.000000e+00 : f32
      %41 = vector.broadcast %cst_33 : f32 to vector<24x128xf32>
      %c0_34 = arith.constant 0 : index
      %c0_35 = arith.constant 0 : index
      %42 = vector.load %arg17[%c0_34, %c0_35] : memref<24x128xf32, #tpu.memory_space<vmem>>, vector<24x128xf32>
      tpu.vector_store %arg17[%c0_34, %c0_35], %41 {strides = array<i32>} : memref<24x128xf32, #tpu.memory_space<vmem>>, vector<24x128xf32>,
    } else {
    }
    %c0_i32_4 = arith.constant 0 : i32
    %c128_i32_5 = arith.constant 128 : i32
    %5 = arith.addi %c0_i32_4, %c128_i32_5 : i32
    %c1_i32_6 = arith.constant 1 : i32
    scf.for %arg21 = %c0_i32_4 to %5 step %c1_i32_6  : i32 {
      %c1_i32_33 = arith.constant 1 : i32
      %41 = arith.muli %arg21, %c1_i32_33 : i32
      %c0_i32_34 = arith.constant 0 : i32
      %42 = arith.addi %c0_i32_34, %41 : i32
      %c0_i32_35 = arith.constant 0 : i32
      %c0_i32_36 = arith.constant 0 : i32
      %c0_i32_37 = arith.constant 0 : i32
      %43 = tpu.memref_slice %arg3[%c0_i32_35, %c0_i32_37] : memref<24x128xf32, #tpu.memory_space<any>> -> memref<1x128xf32, #tpu.memory_space<any>>
      %44 = tpu.memref_squeeze %43 : memref<1x128xf32, #tpu.memory_space<any>> -> memref<128xf32, #tpu.memory_space<any>>
      %c0_i32_38 = arith.constant 0 : i32
      %45 = tpu.memref_slice %arg18[%42, %c0_i32_38] : memref<128x128xf32, #tpu.memory_space<vmem>> -> memref<1x128xf32, #tpu.memory_space<vmem>>
      %46 = tpu.memref_squeeze %45 : memref<1x128xf32, #tpu.memory_space<vmem>> -> memref<128xf32, #tpu.memory_space<vmem>>
      %47 = tpu.memref_slice %arg20[%c0_i32_36] : memref<2x!tpu.dma_semaphore, #tpu.memory_space<semaphore_mem>> -> memref<1x!tpu.dma_semaphore, #tpu.memory_space<semaphore_mem>>
      %48 = tpu.memref_squeeze %47 : memref<1x!tpu.dma_semaphore, #tpu.memory_space<semaphore_mem>> -> memref<!tpu.dma_semaphore, #tpu.memory_space<semaphore_mem>>
      tpu.wait_dma2 semaphore(%48 : memref<!tpu.dma_semaphore, #tpu.memory_space<semaphore_mem>>) src(%44 : memref<128xf32, #tpu.memory_space<any>>) dst(%46 : memref<128xf32, #tpu.memory_space<vmem>>)
      %c0_i32_39 = arith.constant 0 : i32
      %c1_i32_40 = arith.constant 1 : i32
      %c0_i32_41 = arith.constant 0 : i32
      %49 = tpu.memref_slice %arg4[%c0_i32_39, %c0_i32_41] : memref<40x128xf32, #tpu.memory_space<any>> -> memref<1x128xf32, #tpu.memory_space<any>>
      %50 = tpu.memref_squeeze %49 : memref<1x128xf32, #tpu.memory_space<any>> -> memref<128xf32, #tpu.memory_space<any>>
      %c0_i32_42 = arith.constant 0 : i32
      %51 = tpu.memref_slice %arg19[%42, %c0_i32_42] : memref<128x128xf32, #tpu.memory_space<vmem>> -> memref<1x128xf32, #tpu.memory_space<vmem>>
      %52 = tpu.memref_squeeze %51 : memref<1x128xf32, #tpu.memory_space<vmem>> -> memref<128xf32, #tpu.memory_space<vmem>>
      %53 = tpu.memref_slice %arg20[%c1_i32_40] : memref<2x!tpu.dma_semaphore, #tpu.memory_space<semaphore_mem>> -> memref<1x!tpu.dma_semaphore, #tpu.memory_space<semaphore_mem>>
      %54 = tpu.memref_squeeze %53 : memref<1x!tpu.dma_semaphore, #tpu.memory_space<semaphore_mem>> -> memref<!tpu.dma_semaphore, #tpu.memory_space<semaphore_mem>>
      tpu.wait_dma2 semaphore(%54 : memref<!tpu.dma_semaphore, #tpu.memory_space<semaphore_mem>>) src(%50 : memref<128xf32, #tpu.memory_space<any>>) dst(%52 : memref<128xf32, #tpu.memory_space<vmem>>)
    }
    %c128_i32_7 = arith.constant 128 : i32
    %c0 = arith.constant 0 : index
    %c0_8 = arith.constant 0 : index
    %6 = vector.load %arg18[%c0, %c0_8] : memref<128x128xf32, #tpu.memory_space<vmem>>, vector<128x128xf32>
    %c0_9 = arith.constant 0 : index
    %c0_10 = arith.constant 0 : index
    %7 = vector.load %arg19[%c0_9, %c0_10] : memref<128x128xf32, #tpu.memory_space<vmem>>, vector<128x128xf32>
    %8 = tpu.concatenate %6, %7 in 1 : vector<128x128xf32>, vector<128x128xf32> -> vector<128x256xf32>
    %9 = arith.truncf %8 : vector<128x256xf32> to vector<128x256xbf16>
    %c0_11 = arith.constant 0 : index
    %c0_12 = arith.constant 0 : index
    %10 = vector.load %arg9[%c0_11, %c0_12] : memref<256x128xbf16, #tpu.memory_space<vmem>>, vector<256x128xbf16>
    %cst = arith.constant dense<0.000000e+00> : vector<128x128xf32>
    %11 = tpu.matmul %9, %10, %cst {dimension_numbers = #tpu.dot_dimension_numbers<[1], [0], [0], [1], [0, 0, 1, 1], [], []>} : vector<128x256xbf16>, vector<256x128xbf16>, vector<128x128xf32> -> vector<128x128xf32>
    %c0_13 = arith.constant 0 : index
    %c0_14 = arith.constant 0 : index
    %12 = vector.load %arg10[%c0_13, %c0_14] : memref<1x128xf32, #tpu.memory_space<vmem>>, vector<1x128xf32>
    %13 = vector.broadcast %12 : vector<1x128xf32> to vector<128x128xf32>
    %14 = arith.addf %11, %13 : vector<128x128xf32>
    %c0_15 = arith.constant 0 : index
    %c0_16 = arith.constant 0 : index
    %15 = vector.load %arg6[%c0_15, %c0_16] : memref<128x1xf32, #tpu.memory_space<vmem>>, vector<128x1xf32>
    %16 = vector.broadcast %15 : vector<128x1xf32> to vector<128x128xf32>
    %17 = arith.mulf %16, %14 : vector<128x128xf32>
    %c0_17 = arith.constant 0 : index
    %c0_18 = arith.constant 0 : index
    %18 = vector.load %arg7[%c0_17, %c0_18] : memref<128x1xf32, #tpu.memory_space<vmem>>, vector<128x1xf32>
    %19 = vector.broadcast %18 : vector<128x1xf32> to vector<128x128xf32>
    %20 = arith.mulf %19, %14 : vector<128x128xf32>
    %c0_19 = arith.constant 0 : index
    %c0_20 = arith.constant 0 : index
    %21 = vector.load %arg8[%c0_19, %c0_20] : memref<128x1xf32, #tpu.memory_space<vmem>>, vector<128x1xf32>
    %22 = vector.broadcast %21 : vector<128x1xf32> to vector<128x128xf32>
    %23 = arith.mulf %22, %14 : vector<128x128xf32>
    %24 = tpu.concatenate %17, %20, %23 in 1 : vector<128x128xf32>, vector<128x128xf32>, vector<128x128xf32> -> vector<128x384xf32>
    %25 = arith.truncf %24 : vector<128x384xf32> to vector<128x384xbf16>
    %c0_21 = arith.constant 0 : index
    %c0_22 = arith.constant 0 : index
    %26 = vector.load %arg11[%c0_21, %c0_22] : memref<384x128xbf16, #tpu.memory_space<vmem>>, vector<384x128xbf16>
    %cst_23 = arith.constant dense<0.000000e+00> : vector<128x128xf32>
    %27 = tpu.matmul %25, %26, %cst_23 {dimension_numbers = #tpu.dot_dimension_numbers<[1], [0], [0], [1], [0, 0, 1, 1], [], []>} : vector<128x384xbf16>, vector<384x128xbf16>, vector<128x128xf32> -> vector<128x128xf32>
    %28 = tpu.iota {dimensions = array<i32: 0>} : vector<24x128xi32>
    %c0_24 = arith.constant 0 : index
    %c0_25 = arith.constant 0 : index
    %29 = vector.load %arg5[%c0_24, %c0_25] : memref<1x128xi32, #tpu.memory_space<vmem>>, vector<1x128xi32>
    %30 = vector.broadcast %29 : vector<1x128xi32> to vector<24x128xi32>
    %31 = arith.cmpi eq, %28, %30 : vector<24x128xi32>
    %32 = arith.extui %31 : vector<24x128xi1> to vector<24x128xi32>
    %33 = arith.sitofp %32 : vector<24x128xi32> to vector<24x128xf32>
    %c0_26 = arith.constant 0 : index
    %c0_27 = arith.constant 0 : index
    %34 = vector.load %arg17[%c0_26, %c0_27] : memref<24x128xf32, #tpu.memory_space<vmem>>, vector<24x128xf32>
    %cst_28 = arith.constant dense<0.000000e+00> : vector<24x128xf32>
    %35 = tpu.matmul %33, %27, %cst_28 {dimension_numbers = #tpu.dot_dimension_numbers<[1], [0], [0], [1], [0, 0, 1, 1], [], []>} : vector<24x128xf32>, vector<128x128xf32>, vector<24x128xf32> -> vector<24x128xf32>
    %36 = arith.addf %34, %35 : vector<24x128xf32>
    %c0_29 = arith.constant 0 : index
    %c0_30 = arith.constant 0 : index
    %37 = vector.load %arg17[%c0_29, %c0_30] : memref<24x128xf32, #tpu.memory_space<vmem>>, vector<24x128xf32>
    tpu.vector_store %arg17[%c0_29, %c0_30], %36 {strides = array<i32>} : memref<24x128xf32, #tpu.memory_space<vmem>>, vector<24x128xf32>,
    %c1_i32_31 = arith.constant 1 : i32
    %38 = arith.cmpi eq, %arg0, %c1_i32_31 : i32
    %39 = arith.extui %38 : i1 to i32
    %c0_i32_32 = arith.constant 0 : i32
    %40 = arith.cmpi ne, %39, %c0_i32_32 : i32
    scf.if %40 {
      %c0_33 = arith.constant 0 : index
      %c0_34 = arith.constant 0 : index
      %41 = vector.load %arg17[%c0_33, %c0_34] : memref<24x128xf32, #tpu.memory_space<vmem>>, vector<24x128xf32>
      %c0_35 = arith.constant 0 : index
      %c0_36 = arith.constant 0 : index
      %42 = vector.load %arg12[%c0_35, %c0_36] : memref<1x1xf32, #tpu.memory_space<vmem>>, vector<1x1xf32>
      %43 = vector.broadcast %42 : vector<1x1xf32> to vector<24x128xf32>
      %44 = arith.addf %41, %43 : vector<24x128xf32>
      %45 = math.tanh %44 : vector<24x128xf32>
      %c0_37 = arith.constant 0 : index
      %c0_38 = arith.constant 0 : index
      %46 = vector.load %arg13[%c0_37, %c0_38] : memref<128x1xf32, #tpu.memory_space<vmem>>, vector<128x1xf32>
      %cst_39 = arith.constant dense<0.000000e+00> : vector<24x1xf32>
      %47 = tpu.matmul %45, %46, %cst_39 {dimension_numbers = #tpu.dot_dimension_numbers<[1], [0], [0], [1], [0, 0, 1, 1], [], []>} : vector<24x128xf32>, vector<128x1xf32>, vector<24x1xf32> -> vector<24x1xf32>
      %48 = tpu.iota {dimensions = array<i32: 1>} : vector<24x8xi32>
      %c0_40 = arith.constant 0 : index
      %c0_41 = arith.constant 0 : index
      %49 = vector.load %arg14[%c0_40, %c0_41] : memref<24x1xi32, #tpu.memory_space<vmem>>, vector<24x1xi32>
      %50 = vector.broadcast %49 : vector<24x1xi32> to vector<24x8xi32>
      %51 = arith.cmpi eq, %48, %50 : vector<24x8xi32>
      %52 = arith.extui %51 : vector<24x8xi1> to vector<24x8xi32>
      %53 = arith.sitofp %52 : vector<24x8xi32> to vector<24x8xf32>
      %54 = tpu.iota {dimensions = array<i32: 0>} : vector<8x24xi32>
      %c0_42 = arith.constant 0 : index
      %c0_43 = arith.constant 0 : index
      %55 = vector.load %arg15[%c0_42, %c0_43] : memref<1x24xi32, #tpu.memory_space<vmem>>, vector<1x24xi32>
      %56 = vector.broadcast %55 : vector<1x24xi32> to vector<8x24xi32>
      %57 = arith.cmpi eq, %54, %56 : vector<8x24xi32>
      %58 = arith.extui %57 : vector<8x24xi1> to vector<8x24xi32>
      %59 = arith.sitofp %58 : vector<8x24xi32> to vector<8x24xf32>
      %cst_44 = arith.constant 0.000000e+00 : f32
      %60 = vector.broadcast %cst_44 : f32 to vector<24x8xf32>
      %61 = arith.cmpf ogt, %53, %60 : vector<24x8xf32>
      %cst_45 = arith.constant -1.000000e+30 : f32
      %62 = vector.shape_cast %47 : vector<24x1xf32> to vector<24x1xf32>
      %63 = vector.broadcast %62 : vector<24x1xf32> to vector<24x8xf32>
      %64 = vector.broadcast %cst_45 : f32 to vector<24x8xf32>
      %65 = arith.select %61, %63, %64 : vector<24x8xi1>, vector<24x8xf32>
      %cst_46 = arith.constant dense<0xFF800000> : vector<8xf32>
      %66 = vector.multi_reduction <maximumf>, %65, %cst_46 [0] : vector<24x8xf32> to vector<8xf32>
      %67 = vector.shape_cast %66 : vector<8xf32> to vector<1x8xf32>
      %68 = vector.broadcast %67 : vector<1x8xf32> to vector<24x8xf32>
      %69 = arith.mulf %53, %68 : vector<24x8xf32>
      %cst_47 = arith.constant dense<0.000000e+00> : vector<24xf32>
      %70 = vector.multi_reduction <add>, %69, %cst_47 [1] : vector<24x8xf32> to vector<24xf32>
      %71 = vector.shape_cast %70 : vector<24xf32> to vector<24x1xf32>
      %72 = arith.subf %47, %71 : vector<24x1xf32>
      %73 = math.exp %72 : vector<24x1xf32>
      %74 = vector.broadcast %73 : vector<24x1xf32> to vector<24x8xf32>
      %75 = arith.mulf %53, %74 : vector<24x8xf32>
      %cst_48 = arith.constant dense<0.000000e+00> : vector<8xf32>
      %76 = vector.multi_reduction <add>, %75, %cst_48 [0] : vector<24x8xf32> to vector<8xf32>
      %77 = vector.shape_cast %76 : vector<8xf32> to vector<1x8xf32>
      %78 = vector.broadcast %77 : vector<1x8xf32> to vector<24x8xf32>
      %79 = arith.mulf %53, %78 : vector<24x8xf32>
      %cst_49 = arith.constant dense<0.000000e+00> : vector<24xf32>
      %80 = vector.multi_reduction <add>, %79, %cst_49 [1] : vector<24x8xf32> to vector<24xf32>
      %81 = vector.shape_cast %80 : vector<24xf32> to vector<24x1xf32>
      %82 = arith.divf %73, %81 : vector<24x1xf32>
      %83 = vector.broadcast %82 : vector<24x1xf32> to vector<24x128xf32>
      %84 = arith.mulf %45, %83 : vector<24x128xf32>
      %cst_50 = arith.constant dense<0.000000e+00> : vector<8x128xf32>
      %85 = tpu.matmul %59, %84, %cst_50 {dimension_numbers = #tpu.dot_dimension_numbers<[1], [0], [0], [1], [0, 0, 1, 1], [], []>} : vector<8x24xf32>, vector<24x128xf32>, vector<8x128xf32> -> vector<8x128xf32>
      %c0_51 = arith.constant 0 : index
      %c0_52 = arith.constant 0 : index
      %86 = vector.load %arg16[%c0_51, %c0_52] : memref<8x128xf32, #tpu.memory_space<vmem>>, vector<8x128xf32>
      tpu.vector_store %arg16[%c0_51, %c0_52], %85 {strides = array<i32>} : memref<8x128xf32, #tpu.memory_space<vmem>>, vector<8x128xf32>,
    } else {
    }
    return
  }
  func.func @transform_2(%arg0: i32, %arg1: memref<256xi32, #tpu.memory_space<smem>>, %arg2: memref<256xi32, #tpu.memory_space<smem>>) -> (i32, i32) {
    %c0_i32 = arith.constant 0 : i32
    %c0_i32_0 = arith.constant 0 : i32
    return %c0_i32, %arg0 : i32, i32
  }
  func.func @transform_3(%arg0: i32, %arg1: memref<256xi32, #tpu.memory_space<smem>>, %arg2: memref<256xi32, #tpu.memory_space<smem>>) -> (i32, i32) {
    %c0_i32 = arith.constant 0 : i32
    %c0_i32_0 = arith.constant 0 : i32
    return %arg0, %c0_i32 : i32, i32
  }
  func.func @transform_4(%arg0: i32, %arg1: memref<256xi32, #tpu.memory_space<smem>>, %arg2: memref<256xi32, #tpu.memory_space<smem>>) -> (i32, i32) {
    %c0_i32 = arith.constant 0 : i32
    %c0_i32_0 = arith.constant 0 : i32
    return %arg0, %c0_i32 : i32, i32
  }
  func.func @transform_5(%arg0: i32, %arg1: memref<256xi32, #tpu.memory_space<smem>>, %arg2: memref<256xi32, #tpu.memory_space<smem>>) -> (i32, i32) {
    %c0_i32 = arith.constant 0 : i32
    %c0_i32_0 = arith.constant 0 : i32
    return %arg0, %c0_i32 : i32, i32
  }
  func.func @transform_6(%arg0: i32, %arg1: memref<256xi32, #tpu.memory_space<smem>>, %arg2: memref<256xi32, #tpu.memory_space<smem>>) -> (i32, i32) {
    %c0_i32 = arith.constant 0 : i32
    %c0_i32_0 = arith.constant 0 : i32
    %c0_i32_1 = arith.constant 0 : i32
    return %c0_i32, %c0_i32_0 : i32, i32
  }
  func.func @transform_7(%arg0: i32, %arg1: memref<256xi32, #tpu.memory_space<smem>>, %arg2: memref<256xi32, #tpu.memory_space<smem>>) -> (i32, i32) {
    %c0_i32 = arith.constant 0 : i32
    %c0_i32_0 = arith.constant 0 : i32
    %c0_i32_1 = arith.constant 0 : i32
    return %c0_i32, %c0_i32_0 : i32, i32
  }
  func.func @transform_8(%arg0: i32, %arg1: memref<256xi32, #tpu.memory_space<smem>>, %arg2: memref<256xi32, #tpu.memory_space<smem>>) -> (i32, i32) {
    %c0_i32 = arith.constant 0 : i32
    %c0_i32_0 = arith.constant 0 : i32
    %c0_i32_1 = arith.constant 0 : i32
    return %c0_i32, %c0_i32_0 : i32, i32
  }
  func.func @transform_9(%arg0: i32, %arg1: memref<256xi32, #tpu.memory_space<smem>>, %arg2: memref<256xi32, #tpu.memory_space<smem>>) -> (i32, i32) {
    %c0_i32 = arith.constant 0 : i32
    %c0_i32_0 = arith.constant 0 : i32
    %c0_i32_1 = arith.constant 0 : i32
    return %c0_i32, %c0_i32_0 : i32, i32
  }
  func.func @transform_10(%arg0: i32, %arg1: memref<256xi32, #tpu.memory_space<smem>>, %arg2: memref<256xi32, #tpu.memory_space<smem>>) -> (i32, i32) {
    %c0_i32 = arith.constant 0 : i32
    %c0_i32_0 = arith.constant 0 : i32
    %c0_i32_1 = arith.constant 0 : i32
    return %c0_i32, %c0_i32_0 : i32, i32
  }
  func.func @transform_11(%arg0: i32, %arg1: memref<256xi32, #tpu.memory_space<smem>>, %arg2: memref<256xi32, #tpu.memory_space<smem>>) -> (i32, i32) {
    %c0_i32 = arith.constant 0 : i32
    %c0_i32_0 = arith.constant 0 : i32
    %c0_i32_1 = arith.constant 0 : i32
    return %c0_i32, %c0_i32_0 : i32, i32
  }
  func.func @transform_12(%arg0: i32, %arg1: memref<256xi32, #tpu.memory_space<smem>>, %arg2: memref<256xi32, #tpu.memory_space<smem>>) -> (i32, i32) {
    %c0_i32 = arith.constant 0 : i32
    %c0_i32_0 = arith.constant 0 : i32
    %c0_i32_1 = arith.constant 0 : i32
    return %c0_i32, %c0_i32_0 : i32, i32
  }
  func.func @transform_13(%arg0: i32, %arg1: memref<256xi32, #tpu.memory_space<smem>>, %arg2: memref<256xi32, #tpu.memory_space<smem>>) -> (i32, i32) {
    %c0_i32 = arith.constant 0 : i32
    %c0_i32_0 = arith.constant 0 : i32
    %c0_i32_1 = arith.constant 0 : i32
    return %c0_i32, %c0_i32_0 : i32, i32
  }
}

</mosaic_0001>

<bundles_post_ra>
// kernel: tpu_custom_call.1
= control target key start
LH: loop header
LB: loop body
LE: loop exit
PB: predicated region body
PF: predicated region fallthrough
CT: control target
= control target key end

     0   :  { %s3359_s0 = inlined_call_operand.vmem [shape: s32[256], index: 0, kind: input, shape index: {}]   ;;  %s3360_s2 = inlined_call_operand.vmem [shape: f32[24,128], index: 2, kind: input, shape index: {}]   ;;  %s3361_s3 = inlined_call_operand.vmem [shape: f32[40,128], index: 3, kind: input, shape index: {}]   ;;  %s3362_s4 = inlined_call_operand.vmem [shape: s32[1,256], index: 4, kind: input, shape index: {}]   ;;  %s3363_s5 = inlined_call_operand.vmem [shape: f32[256,1], index: 5, kind: input, shape index: {}]   ;;  %s3364_s6 = inlined_call_operand.vmem [shape: f32[256,1], index: 6, kind: input, shape index: {}]   ;;  %s3365_s7 = inlined_call_operand.vmem [shape: f32[256,1], index: 7, kind: input, shape index: {}]   ;;  %s3366_s8 = inlined_call_operand.vmem [shape: bf16[256,128], index: 8, kind: input, shape index: {}]   ;;  %s3367_s9 = inlined_call_operand.vmem [shape: f32[1,128], index: 9, kind: input, shape index: {}]   ;;  %s3368_s10 = inlined_call_operand.vmem [shape: bf16[384,128], index: 10, kind: input, shape index: {}]   ;;  %s3369_s12 = inlined_call_operand.vmem [shape: f32[128,1], index: 12, kind: input, shape index: {}]   ;;  %s3370_s13 = inlined_call_operand.vmem [shape: s32[24,1], index: 13, kind: input, shape index: {}]   ;;  %s3371_s14 = inlined_call_operand.vmem [shape: s32[1,24], index: 14, kind: input, shape index: {}]   ;;  %s3372_s15 = inlined_call_operand.hbm [shape: f32[8,128], index: 15, kind: output, shape index: {}]   ;;  %s3373_s1 = inlined_call_operand.vmem [shape: s32[256], index: 1, kind: input, shape index: {}]   ;;  %s3374_s11 = inlined_call_operand.<no memory space> [shape: f32[1,1], index: 11, kind: input, shape index: {}]  }
   0x1   :  { %3376 = sst [smem:[#allocation18_spill]] %s3370_s13  ;;  %s20_s20 = sshll.u32 %s3359_s0, 4  ;;  %v28_v0 = vstv %s3374_s11  ;;  %s21_s20 = int_to_ptr.vmem [resolvable:$true] %s20_s20 }
   0x2   :  { %s24_s23 = sshll.u32 %s3373_s1, 4  ;;  %29 = vst [vmem:[#allocation9] sm:$0x1] %v28_v0  ;;  %s2664_s25 = scalar_lea.vmem %s21_s20, 32  ;;  %s25_s23 = int_to_ptr.vmem [resolvable:$true] %s24_s23 }
   0x3   :  { %p2665_p0 = scmp.ne.s32.totalorder %s21_s20, %s2664_s25  ;;  %p2669_p1 = scmp.lt.s32.totalorder %s21_s20, %s21_s20 }
   0x4   :  { %p2670_p2 = scmp.lt.s32.totalorder %s2664_s25, %s2664_s25 }
   0x6   :  { %p2671_p3 = por %p2670_p2, %p2669_p1 }
   0x8   :  { %p2672_p4 = pnand %p2671_p3, %p2665_p0 }
   0xa   :  { %2675 = shalt.err (!%p2672_p4)  }
   0xb   :  { %s2746_s26 = smov [#allocation7]   ;;  %s2676_s0 = scalar_lea.vmem %s25_s23, 32 }
   0xc   :  { %23 = dma.vmem_to_smem %s21_s20, 32, %s2746_s26, [#allocation6] }
   0xd   :  { %p2677_p5 = scmp.ne.s32.totalorder %s25_s23, %s2676_s0  ;;  %p2681_p6 = scmp.lt.s32.totalorder %s25_s23, %s25_s23 }
   0xe   :  { %p2682_p7 = scmp.lt.s32.totalorder %s2676_s0, %s2676_s0 }
  0x10   :  { %p2683_p8 = por %p2682_p7, %p2681_p6 }
  0x12   :  { %p2684_p9 = pnand %p2683_p8, %p2677_p5 }
  0x14   :  { %2687 = shalt.err (!%p2684_p9)  }
  0x15   :  { %s2747_s1 = smov [#allocation8]  }
  0x16   :  { %27 = dma.vmem_to_smem %s25_s23, 32, %s2747_s1, [#allocation6] }
  0x17   :  { %2724 = dma.done.wait [#allocation6], 64 }
  0x18   :  { %2725 = vsyncadd [#allocation6], 4294967232 }
  0x19   :  { %31 = sfence }
  0x1a   :  { %32 = vsyncpa [#allocation11], 0  ;;  %s2846_s11 = smov 0  }
  0x1b LB: > { %s2852_s13 = sadd.s32 4294967295, %s2736_s11   ;;  %p2181_p10 = scmp.ge.s32.totalorder %s2736_s11, 1  ;;  %s2736_s11 = sphi %s2846_s11, %s38_s11  }
  0x1c   : > { %p380_p11 = scmp.lt.s32.totalorder %s2736_s11, 3 }
  0x1e   : > { %p381_p12 = pnand %p2181_p10, %p380_p11 }
  0x1f   : > { %p428_p13 = scmp.lt.s32.totalorder (!%p381_p12), %s2852_s13, 1  ;;  %s2182_s27 = sshll.u32 (!%p381_p12), %s2852_s13, 4 }
  0x20   : > { %384 = sbr.rel (%p381_p12) target bundleno = 2106 (0x83a), region = 64  ;;  %p432_p0 = scmp.lt.s32.totalorder (!%p381_p12), %s2182_s27, 31 }
  0x21   : > { %s2188_s28 = sshll.u32 (!%p381_p12), %s2852_s13, 7  ;;  %s2738_s1 = smov (!%p381_p12), 0  }
  0x25   : > { %s2860_s29 = scalar_select %p428_p13, %s2852_s13, 1 }
  0x26   : > { %s3380_s27 = smov (!%p432_p0, %s2182_s27), 31 }
  0x27   : > { %s2183_s18 = sshll.u32 %s3380_s27, 3 }
  0x28   : > { %s2869_s21 = scalar_lea.vmem %s3363_s5, %s2183_s18  ;;  %s2874_s24 = scalar_lea.vmem %s3364_s6, %s2183_s18 }
  0x29   : > { %s2879_s0 = scalar_lea.vmem %s3365_s7, %s2183_s18 }
  0x2a LB: >> { %s457_s27 = sadd.s32 %s2740_s1, %s2188_s28  ;;  %s460_s22 = scalar_lea.vmem [#allocation3], %s2740_s1  ;;  %s2740_s1 = sphi %s2738_s1, %s456_s1  }
  0x2b   : >> { %s458_s30 = sld [smem:[#allocation7 + %s457_s27]] }
  0x31   : >> { %s459_s20 = scalar_lea.vmem %s3360_s2, %s458_s30 }
  0x32   : >> { %v479_v1 = vld [vmem:[%s459_s20] sm:$0x1] }
  0x33   : >> { %480 = vst [vmem:[%s460_s22] sm:$0x1] %v479_v1 }
  0x34   : >> { %506 = vsyncadd [#allocation5], 16  ;;  %s507_s23 = sld [smem:[#allocation8 + %s457_s27]]  ;;  %s509_s17 = scalar_lea.vmem [#allocation4], %s2740_s1 }
  0x3a   : >> { %s508_s26 = scalar_lea.vmem %s3361_s3, %s507_s23 }
  0x3b   : >> { %v529_v2 = vld [vmem:[%s508_s26] sm:$0x1] }
  0x3c   : >> { %530 = vst [vmem:[%s509_s17] sm:$0x1] %v529_v2 }
  0x3d   : >> { %556 = vsyncadd [#allocation5 + $0x1], 16  ;;  %s456_s1 = sadd.s32 1, %s2740_s1  }
  0x3e   : >> { %p453_p1 = scmp.ge.s32.totalorder %s456_s1, 128  }
  0x3f   : > { %p2189_p2 = scmp.ne.s32.totalorder (%p453_p1), %s2852_s13, 0 }
  0x40   : > { %455 = sbr.rel (!%p453_p1) target bundleno = 42 (0x2a), region = 209 }
  0x45   : > { %560 = sbr.rel (%p2189_p2) target bundleno = 77 (0x4d), region = 135 }
  0x4a   : > { %v2748_v3 = vmov 0.0  }
  0x4b   : > { %561 = vst [vmem:[#allocation2 + $0x10] sm:$0xff] %v2748_v3  ;;  %562 = vst [vmem:[#allocation2] sm:$0xff] %v2748_v3 }
  0x4c   : > { %563 = vst [vmem:[#allocation2 + $0x8] sm:$0xff] %v2748_v3 }
  0x4d PF: > { %s2742_s27 = smov 0  }
  0x4e LB: >> { %2726 = dma.done.wait [#allocation5], 16  ;;  %s2744_s27 = sphi %s2742_s27, %s569_s27  }
  0x4f   : >> { %2727 = vsyncadd [#allocation5], 4294967280 }
  0x50   : >> { %2728 = dma.done.wait [#allocation5 + $0x1], 16 }
  0x51   : >> { %2729 = vsyncadd [#allocation5 + $0x1], 4294967280  ;;  %s569_s27 = sadd.s32 1, %s2744_s27  }
  0x52   : >> { %p566_p3 = scmp.ge.s32.totalorder %s569_s27, 128  }
  0x53   : > { %v967_v4 = vld [vmem:[%s2874_s24] sm:$0xff] (%p566_p3)  ;;  %v2749_v6 = vmov (%p566_p3), 0   ;;  %v2604_v7 = vld [vmem:[%s3366_s8 + $0x78] sm:$0xff] (%p566_p3)   ;;  %v968_v9 = vld [vmem:[%s2874_s24 + $0x8] sm:$0xff] (%p566_p3)  ;;  %vm2751_vm0 = vmmov (%p566_p3), 0   ;;  %s3377_s18 = scalar_lea.vmem (%p566_p3), %s3362_s4, %s2860_s29  ;;  %p2238_p4 = scmp.ne.s32.totalorder (%p566_p3), %s2852_s13, 1 }
  0x54   : > { %568 = sbr.rel (!%p566_p3) target bundleno = 78 (0x4e), region = 220  ;;  %v855_v5 = vld [vmem:[%s2869_s21] sm:$0xff] (%p566_p3)  ;;  %2603 = vset.pattern.permute.xlu1 (%p566_p3), %v2749_v6  ;;  %2602 = vset.pattern.permute.xlu0 (%p566_p3), %v2749_v6  ;;  %v2605_v8 = vld [vmem:[%s3366_s8 + $0x38] sm:$0xff] (%p566_p3)   ;;  %v856_v10 = vld [vmem:[%s2869_s21 + $0x8] sm:$0xff] (%p566_p3) }
  0x55   : > { %985 = vperm.xlu0 (%p566_p3), %2602, %v967_v4   ;;  %873 = vperm.xlu1 (%p566_p3), %2603, %v855_v5   ;;  %v2606_v11 = vld [vmem:[%s3366_s8 + $0x70] sm:$0xff] (%p566_p3)   ;;  %v2608_v14 = vld [vmem:[%s3366_s8 + $0x68] sm:$0xff] (%p566_p3)   ;;  %v970_v15 = vld [vmem:[%s2874_s24 + $0x18] sm:$0xff] (%p566_p3) }
  0x56   : > { %2252 = vmatprep.subr.bf16.mxu0 (%p566_p3), %v2604_v7  ;;  %v2607_v12 = vld [vmem:[%s3366_s8 + $0x30] sm:$0xff] (%p566_p3)   ;;  %v2609_v16 = vld [vmem:[%s3366_s8 + $0x28] sm:$0xff] (%p566_p3)   ;;  %v2610_v17 = vld [vmem:[%s3366_s8 + $0x60] sm:$0xff] (%p566_p3)  }
  0x57   : > { %2253 = vmatpush3.bf16.msra.mxu0 (%p566_p3), %v2605_v8  ;;  %v969_v13 = vld [vmem:[%s2874_s24 + $0x10] sm:$0xff] (%p566_p3)  ;;  %v858_v19 = vld [vmem:[%s2869_s21 + $0x18] sm:$0xff] (%p566_p3)  ;;  %v2611_v20 = vld [vmem:[%s3366_s8 + $0x20] sm:$0xff] (%p566_p3)  }
  0x58   : > { %2254 = vmatprep.subr.bf16.mxu0 (%p566_p3), %v2606_v11  ;;  %v857_v18 = vld [vmem:[%s2869_s21 + $0x10] sm:$0xff] (%p566_p3)  ;;  %v2612_v21 = vld [vmem:[%s3366_s8 + $0x58] sm:$0xff] (%p566_p3)   ;;  %v971_v22 = vld [vmem:[%s2874_s24 + $0x20] sm:$0xff] (%p566_p3) }
  0x59   : > { %990 = vperm.xlu0 %2602, %v968_v9   ;;  %878 = vperm.xlu1 %2603, %v856_v10   ;;  %v972_v23 = vld [vmem:[%s2874_s24 + $0x28] sm:$0xff]  ;;  %v2613_v24 = vld [vmem:[%s3366_s8 + $0x18] sm:$0xff]   ;;  %v2614_v25 = vld [vmem:[%s3366_s8 + $0x50] sm:$0xff]   ;;  %s3378_s17 = sld [smem:[#allocation18_spill]] (!%p2238_p4) }
  0x5a   : > { %v859_v26 = vld [vmem:[%s2869_s21 + $0x20] sm:$0xff]  ;;  %v860_v27 = vld [vmem:[%s2869_s21 + $0x28] sm:$0xff]  ;;  %v2615_v28 = vld [vmem:[%s3366_s8 + $0x10] sm:$0xff]  }
  0x5b   : > { %2255 = vmatpush3.bf16.msra.mxu0 %v2607_v12  ;;  %v2616_v29 = vld [vmem:[%s3366_s8 + $0x48] sm:$0xff]   ;;  %v591_v30 = vld [vmem:[#allocation4] sm:$0xff]  ;;  %v592_v31 = vld [vmem:[#allocation4 + $0x8] sm:$0xff] }
  0x5c   : > { %2256 = vmatprep.subr.bf16.mxu0 %v2608_v14  ;;  %v973_v32 = vld [vmem:[%s2874_s24 + $0x30] sm:$0xff]  ;;  %v974_v33 = vld [vmem:[%s2874_s24 + $0x38] sm:$0xff]  ;;  %v608_v34 = vpack.c.bf16 %v592_v31, %v591_v30  ;;  %v2617_v35 = vld [vmem:[%s3366_s8 + $0x8] sm:$0xff]  }
  0x5d   : > { %995 = vperm.xlu0 %2602, %v969_v13   ;;  %1000 = vperm.xlu1 %2603, %v970_v15   ;;  %v2618_v36 = vld [vmem:[%s3366_s8 + $0x40] sm:$0xff]   ;;  %v861_v37 = vld [vmem:[%s2869_s21 + $0x30] sm:$0xff]  ;;  %v862_v38 = vld [vmem:[%s2869_s21 + $0x38] sm:$0xff] }
  0x5e   : > { %790 = vmatprep.mubr.bf16.mxu0 %v608_v34  ;;  %v2619_v39 = vld [vmem:[%s3366_s8] sm:$0xff]   ;;  %v575_v40 = vld [vmem:[#allocation3] sm:$0xff]  ;;  %v593_v42 = vld [vmem:[#allocation4 + $0x10] sm:$0xff] }
  0x5f   : > { %2257 = vmatpush3.bf16.msra.mxu0 %v2609_v16  ;;  %v576_v41 = vld [vmem:[#allocation3 + $0x8] sm:$0xff]  ;;  %v594_v43 = vld [vmem:[#allocation4 + $0x18] sm:$0xff]  ;;  %v976_v45 = vld [vmem:[%s2874_s24 + $0x48] sm:$0xff] }
  0x60   : > { %2258 = vmatprep.subr.bf16.mxu0 %v2610_v17  ;;  %v975_v44 = vld [vmem:[%s2874_s24 + $0x40] sm:$0xff]  ;;  %v607_v46 = vpack.c.bf16 %v576_v41, %v575_v40  ;;  %v610_v47 = vpack.c.bf16 %v594_v43, %v593_v42  ;;  %v864_v49 = vld [vmem:[%s2869_s21 + $0x48] sm:$0xff]  ;;  %v578_v51 = vld [vmem:[#allocation3 + $0x18] sm:$0xff] }
  0x61   : > { %883 = vperm.xlu0 %2602, %v857_v18   ;;  %888 = vperm.xlu1 %2603, %v858_v19   ;;  %v863_v48 = vld [vmem:[%s2869_s21 + $0x40] sm:$0xff]  ;;  %v577_v50 = vld [vmem:[#allocation3 + $0x10] sm:$0xff]  ;;  %v595_v52 = vld [vmem:[#allocation4 + $0x20] sm:$0xff] }
  0x62   : > { %v596_v53 = vld [vmem:[#allocation4 + $0x28] sm:$0xff]  ;;  %v1080_v55 = vld [vmem:[%s2879_s0 + $0x8] sm:$0xff]  ;;  %v609_v56 = vpack.c.bf16 %v578_v51, %v577_v50  ;;  %v1081_v58 = vld [vmem:[%s2879_s0 + $0x10] sm:$0xff] }
  0x63   : > { %2259 = vmatpush3.bf16.msra.mxu0 %v2611_v20  ;;  %v1079_v54 = vld [vmem:[%s2879_s0] sm:$0xff]  ;;  %v612_v57 = vpack.c.bf16 %v596_v53, %v595_v52  ;;  %v1082_v59 = vld [vmem:[%s2879_s0 + $0x18] sm:$0xff]  ;;  %v597_v62 = vld [vmem:[#allocation4 + $0x30] sm:$0xff] }
  0x64   : > { %2260 = vmatprep.subr.bf16.mxu0 %v2612_v21  ;;  %v579_v60 = vld [vmem:[#allocation3 + $0x20] sm:$0xff]  ;;  %v580_v61 = vld [vmem:[#allocation3 + $0x28] sm:$0xff]  ;;  %v598_v63 = vld [vmem:[#allocation4 + $0x38] sm:$0xff] }
  0x65   : > { %1005 = vperm.xlu0 %2602, %v971_v22   ;;  %1010 = vperm.xlu1 %2603, %v972_v23   ;;  %v977_v0 = vld [vmem:[%s2874_s24 + $0x50] sm:$0xff]  ;;  %v978_v1 = vld [vmem:[%s2874_s24 + $0x58] sm:$0xff]  ;;  %v611_v2 = vpack.c.bf16 %v580_v61, %v579_v60  ;;  %v614_v3 = vpack.c.bf16 %v598_v63, %v597_v62  ;;  %v581_v6 = vld [vmem:[#allocation3 + $0x30] sm:$0xff] }
  0x66   : > { %v865_v4 = vld [vmem:[%s2869_s21 + $0x50] sm:$0xff]  ;;  %v866_v5 = vld [vmem:[%s2869_s21 + $0x58] sm:$0xff]  ;;  %v600_v9 = vld [vmem:[#allocation4 + $0x48] sm:$0xff] }
  0x67   : > { %2261 = vmatpush3.bf16.msra.mxu0 %v2613_v24  ;;  %v582_v7 = vld [vmem:[#allocation3 + $0x38] sm:$0xff]  ;;  %v599_v8 = vld [vmem:[#allocation4 + $0x40] sm:$0xff]  ;;  %v1083_v10 = vld [vmem:[%s2879_s0 + $0x20] sm:$0xff] }
  0x68   : > { %2262 = vmatprep.subr.bf16.mxu0 %v2614_v25  ;;  %v1084_v11 = vld [vmem:[%s2879_s0 + $0x28] sm:$0xff]  ;;  %v613_v12 = vpack.c.bf16 %v582_v7, %v581_v6  ;;  %v616_v13 = vpack.c.bf16 %v600_v9, %v599_v8  ;;  %v1085_v14 = vld [vmem:[%s2879_s0 + $0x30] sm:$0xff]  ;;  %v1086_v15 = vld [vmem:[%s2879_s0 + $0x38] sm:$0xff] }
  0x69   : > { %893 = vperm.xlu0 %2602, %v859_v26   ;;  %898 = vperm.xlu1 %2603, %v860_v27   ;;  %v583_v16 = vld [vmem:[#allocation3 + $0x40] sm:$0xff]  ;;  %v584_v17 = vld [vmem:[#allocation3 + $0x48] sm:$0xff]  ;;  %v601_v18 = vld [vmem:[#allocation4 + $0x50] sm:$0xff] }
  0x6a   : > { %v602_v19 = vld [vmem:[#allocation4 + $0x58] sm:$0xff]  ;;  %v979_v20 = vld [vmem:[%s2874_s24 + $0x60] sm:$0xff]  ;;  %v980_v21 = vld [vmem:[%s2874_s24 + $0x68] sm:$0xff]  ;;  %v615_v22 = vpack.c.bf16 %v584_v17, %v583_v16 }
  0x6b   : > { %2263 = vmatpush3.bf16.msra.mxu0 %v2615_v28  ;;  %v618_v23 = vpack.c.bf16 %v602_v19, %v601_v18  ;;  %v867_v24 = vld [vmem:[%s2869_s21 + $0x60] sm:$0xff]  ;;  %v868_v25 = vld [vmem:[%s2869_s21 + $0x68] sm:$0xff]  ;;  %v586_v27 = vld [vmem:[#allocation3 + $0x58] sm:$0xff] }
  0x6c   : > { %2264 = vmatprep.subr.bf16.mxu0 %v2616_v29  ;;  %v585_v26 = vld [vmem:[#allocation3 + $0x50] sm:$0xff]  ;;  %v603_v28 = vld [vmem:[#allocation4 + $0x60] sm:$0xff]  ;;  %v604_v29 = vld [vmem:[#allocation4 + $0x68] sm:$0xff] }
  0x6d   : > { %1015 = vperm.xlu0 %2602, %v973_v32   ;;  %1020 = vperm.xlu1 %2603, %v974_v33   ;;  %v1087_v30 = vld [vmem:[%s2879_s0 + $0x40] sm:$0xff]  ;;  %v1088_v31 = vld [vmem:[%s2879_s0 + $0x48] sm:$0xff]  ;;  %v617_v32 = vpack.c.bf16 %v586_v27, %v585_v26  ;;  %v620_v33 = vpack.c.bf16 %v604_v29, %v603_v28  ;;  %v1089_v34 = vld [vmem:[%s2879_s0 + $0x50] sm:$0xff] }
  0x6e   : > { %v981_v40 = vld [vmem:[%s2874_s24 + $0x70] sm:$0xff]  ;;  %v982_v41 = vld [vmem:[%s2874_s24 + $0x78] sm:$0xff]  ;;  %v1091_v52 = vld [vmem:[%s2879_s0 + $0x60] sm:$0xff] }
  0x6f   : > { %2265 = vmatpush3.bf16.msra.mxu0 %v2617_v35  ;;  %v1090_v35 = vld [vmem:[%s2879_s0 + $0x58] sm:$0xff]  ;;  %v2622_v50 = vld [vmem:[%s3368_s10 + $0x70] sm:$0xff]   ;;  %v1092_v53 = vld [vmem:[%s2879_s0 + $0x68] sm:$0xff] }
  0x70   : > { %2266 = vmatprep.subr.bf16.mxu0 %v2618_v36  ;;  %v587_v36 = vld [vmem:[#allocation3 + $0x60] sm:$0xff]  ;;  %v2623_v51 = vld [vmem:[%s3368_s10 + $0x30] sm:$0xff]   ;;  %v2628_v61 = vld [vmem:[%s3368_s10 + $0x60] sm:$0xff]  }
  0x71   : > { %903 = vperm.xlu0 %2602, %v861_v37   ;;  %908 = vperm.xlu1 %2603, %v862_v38   ;;  %v588_v37 = vld [vmem:[#allocation3 + $0x68] sm:$0xff]  ;;  %v605_v38 = vld [vmem:[#allocation4 + $0x70] sm:$0xff]  ;;  %v1094_v60 = vld [vmem:[%s2879_s0 + $0x78] sm:$0xff] }
  0x72   : > { %v619_v42 = vpack.c.bf16 %v588_v37, %v587_v36  ;;  %v2629_v62 = vld [vmem:[%s3368_s10 + $0x20] sm:$0xff]   ;;  %v2630_v63 = vld [vmem:[%s3368_s10 + $0xa8] sm:$0xff]   ;;  %v2639_v8 = vld [vmem:[%s3368_s10 + $0x90] sm:$0xff]  }
  0x73   : > { %2267 = vmatpush3.bf16.msra.mxu0 %v2619_v39  ;;  %v606_v39 = vld [vmem:[#allocation4 + $0x78] sm:$0xff]  ;;  %v2637_v6 = vld [vmem:[%s3368_s10 + $0x48] sm:$0xff]   ;;  %v2640_v9 = vld [vmem:[%s3368_s10 + $0x40] sm:$0xff]  }
  0x74   : > { %v622_v43 = vpack.c.bf16 %v606_v39, %v605_v38  ;;  %v2638_v7 = vld [vmem:[%s3368_s10 + $0x8] sm:$0xff]  }
  0x75   : > { %1025 = vperm.xlu0 %2602, %v975_v44   ;;  %1030 = vperm.xlu1 %2603, %v976_v45   ;;  %v2620_v44 = vld [vmem:[%s3368_s10 + $0x78] sm:$0xff]  }
  0x76   : > { %791 = vmatmul.mubr.bf16.vlgmr.msra.gmra.mxu0 %v607_v46  ;;  %v2621_v45 = vld [vmem:[%s3368_s10 + $0x38] sm:$0xff]   ;;  %v869_v46 = vld [vmem:[%s2869_s21 + $0x70] sm:$0xff]  ;;  %2316 = vmatprep.subr.bf16.mxu1 %v2620_v44 }
  0x77   : > { %798 = vmatprep.mubr.bf16.mxu0 %v610_v47  ;;  %v870_v47 = vld [vmem:[%s2869_s21 + $0x78] sm:$0xff]  ;;  %2317 = vmatpush3.bf16.msra.mxu1 %v2621_v45 }
  0x78   : > { %2318 = vmatprep.subr.bf16.mxu1 %v2622_v50 }
  0x79   : > { %913 = vperm.xlu0 %2602, %v863_v48   ;;  %918 = vperm.xlu1 %2603, %v864_v49   ;;  %v589_v48 = vld [vmem:[#allocation3 + $0x70] sm:$0xff]  ;;  %v590_v49 = vld [vmem:[#allocation3 + $0x78] sm:$0xff] }
  0x7b   : > { %2319 = vmatpush3.bf16.msra.mxu1 %v2623_v51 }
  0x7d   : > { %1097 = vperm.xlu0 %2602, %v1079_v54   ;;  %1102 = vperm.xlu1 %2603, %v1080_v55   ;;  %v621_v54 = vpack.c.bf16 %v590_v49, %v589_v48  ;;  %v2624_v55 = vld [vmem:[%s3368_s10 + $0xb8] sm:$0xff]  }
  0x7e   : > { %799 = vmatmul.mubr.bf16.gmra.mxu0 %v609_v56  ;;  %v2625_v56 = vld [vmem:[%s3368_s10 + $0x68] sm:$0xff]   ;;  %2438 = vmatprep.subr.bf16.mxu0 %v2624_v55 }
  0x7f   : > { %806 = vmatprep.mubr.bf16.mxu0 %v612_v57  ;;  %v2626_v57 = vld [vmem:[%s3368_s10 + $0x28] sm:$0xff]   ;;  %2320 = vmatprep.subr.bf16.mxu1 %v2625_v56 }
  0x80   : > { %2439 = vmatpush3.bf16.msra.mxu0 %v2624_v55  ;;  %2321 = vmatpush3.bf16.msra.mxu1 %v2626_v57 }
  0x81   : > { %1107 = vperm.xlu0 %2602, %v1081_v58   ;;  %1112 = vperm.xlu1 %2603, %v1082_v59   ;;  %v2627_v58 = vld [vmem:[%s3368_s10 + $0xb0] sm:$0xff]  }
  0x82   : > { %v1093_v59 = vld [vmem:[%s2879_s0 + $0x70] sm:$0xff]  ;;  %2440 = vmatprep.subr.bf16.mxu0 %v2627_v58  ;;  %2322 = vmatprep.subr.bf16.mxu1 %v2628_v61 }
  0x84   : > { %2441 = vmatpush3.bf16.msra.mxu0 %v2627_v58  ;;  %2323 = vmatpush3.bf16.msra.mxu1 %v2629_v62 }
  0x85   : > { %1035 = vperm.xlu0 %2602, %v977_v0   ;;  %1040 = vperm.xlu1 %2603, %v978_v1   ;;  %v2631_v0 = vld [vmem:[%s3368_s10 + $0x58] sm:$0xff]  }
  0x86   : > { %807 = vmatmul.mubr.bf16.gmra.mxu0 %v611_v2  ;;  %2442 = vmatprep.subr.bf16.mxu0 %v2630_v63  ;;  %v2632_v1 = vld [vmem:[%s3368_s10 + $0x18] sm:$0xff]   ;;  %v2633_v2 = vld [vmem:[%s3368_s10 + $0xa0] sm:$0xff]  }
  0x87   : > { %814 = vmatprep.mubr.bf16.mxu0 %v614_v3  ;;  %2324 = vmatprep.subr.bf16.mxu1 %v2631_v0  ;;  %v2634_v3 = vld [vmem:[%s3368_s10 + $0x50] sm:$0xff]  }
  0x88   : > { %2443 = vmatpush3.bf16.msra.mxu0 %v2630_v63  ;;  %2325 = vmatpush3.bf16.msra.mxu1 %v2632_v1 }
  0x89   : > { %923 = vperm.xlu0 %2602, %v865_v4   ;;  %928 = vperm.xlu1 %2603, %v866_v5   ;;  %v2635_v4 = vld [vmem:[%s3368_s10 + $0x10] sm:$0xff]   ;;  %v2636_v5 = vld [vmem:[%s3368_s10 + $0x98] sm:$0xff]  }
  0x8a   : > { %2444 = vmatprep.subr.bf16.mxu0 %v2633_v2  ;;  %2326 = vmatprep.subr.bf16.mxu1 %v2634_v3 }
  0x8c   : > { %2445 = vmatpush3.bf16.msra.mxu0 %v2633_v2  ;;  %2327 = vmatpush3.bf16.msra.mxu1 %v2635_v4 }
  0x8d   : > { %1117 = vperm.xlu0 %2602, %v1083_v10   ;;  %1122 = vperm.xlu1 %2603, %v1084_v11   ;;  %v2641_v10 = vld [vmem:[%s3368_s10] sm:$0xff]   ;;  %v2642_v11 = vld [vmem:[%s3368_s10 + $0x88] sm:$0xff]  }
  0x8e   : > { %815 = vmatmul.mubr.bf16.gmra.mxu0 %v613_v12  ;;  %2446 = vmatprep.subr.bf16.mxu0 %v2636_v5  ;;  %v2643_v12 = vld [vmem:[%s3368_s10 + $0x80] sm:$0xff]  }
  0x8f   : > { %822 = vmatprep.mubr.bf16.mxu0 %v616_v13  ;;  %2328 = vmatprep.subr.bf16.mxu1 %v2637_v6 }
  0x90   : > { %2447 = vmatpush3.bf16.msra.mxu0 %v2636_v5  ;;  %2329 = vmatpush3.bf16.msra.mxu1 %v2638_v7 }
  0x91   : > { %1127 = vperm.xlu0 %2602, %v1085_v14   ;;  %1132 = vperm.xlu1 %2603, %v1086_v15  }
  0x92   : > { %2448 = vmatprep.subr.bf16.mxu0 %v2639_v8  ;;  %2330 = vmatprep.subr.bf16.mxu1 %v2640_v9 }
  0x94   : > { %2449 = vmatpush3.bf16.msra.mxu0 %v2639_v8  ;;  %2331 = vmatpush3.bf16.msra.mxu1 %v2641_v10 }
  0x95   : > { %1045 = vperm.xlu0 %2602, %v979_v20   ;;  %1050 = vperm.xlu1 %2603, %v980_v21  }
  0x96   : > { %823 = vmatmul.mubr.bf16.gmra.mxu0 %v615_v22  ;;  %2450 = vmatprep.subr.bf16.mxu0 %v2642_v11 }
  0x97   : > { %830 = vmatprep.mubr.bf16.mxu0 %v618_v23 }
  0x98   : > { %2451 = vmatpush3.bf16.msra.mxu0 %v2642_v11 }
  0x99   : > { %933 = vperm.xlu0 %2602, %v867_v24   ;;  %938 = vperm.xlu1 %2603, %v868_v25  }
  0x9a   : > { %2452 = vmatprep.subr.bf16.mxu0 %v2643_v12 }
  0x9c   : > { %2453 = vmatpush3.bf16.msra.mxu0 %v2643_v12 }
  0x9d   : > { %1137 = vperm.xlu0 %2602, %v1087_v30   ;;  %1142 = vperm.xlu1 %2603, %v1088_v31  }
  0x9e   : > { %831 = vmatmul.mubr.bf16.gmra.mxu0 %v617_v32 }
  0x9f   : > { %838 = vmatprep.mubr.bf16.mxu0 %v620_v33 }
  0xa1   : > { %1147 = vperm.xlu0 %2602, %v1089_v34   ;;  %1152 = vperm.xlu1 %2603, %v1090_v35  }
  0xa5   : > { %1055 = vperm.xlu0 %2602, %v981_v40   ;;  %1060 = vperm.xlu1 %2603, %v982_v41  }
  0xa6   : > { %839 = vmatmul.mubr.bf16.gmra.mxu0 %v619_v42  ;;  %v3093_v42 = vld [vmem:[%s3367_s9] ss:$0 sm:$0xff] }
  0xa7   : > { %846 = vmatprep.mubr.bf16.mxu0 %v622_v43 }
  0xa9   : > { %943 = vperm.xlu0 %2602, %v869_v46   ;;  %948 = vperm.xlu1 %2603, %v870_v47  }
  0xad   : > { %1157 = vperm.xlu0 %2602, %v1091_v52   ;;  %1162 = vperm.xlu1 %2603, %v1092_v53  }
  0xae   : > { %847 = vmatmul.mubr.bf16.gmra.mxu0 %v621_v54 }
  0xb1   : > { %1167 = vperm.xlu0 %2602, %v1093_v59   ;;  %1172 = vperm.xlu1 %2603, %v1094_v60  }
  0xd0   : > { %v986_v13 = vpop.permute.xlu0 %985  ;;  %v874_v14 = vpop.permute.xlu1 %873 }
  0xd4   : > { %v991_v15 = vpop.permute.xlu0 %990  ;;  %v879_v16 = vpop.permute.xlu1 %878 }
  0xd8   : > { %v996_v17 = vpop.permute.xlu0 %995  ;;  %v3058_v18 = vpop.permute.xlu1 %1000 }
  0xdc   : > { %v884_v19 = vpop.permute.xlu0 %883  ;;  %v889_v20 = vpop.permute.xlu1 %888 }
  0xe0   : > { %v3060_v21 = vpop.permute.xlu0 %1005  ;;  %v3062_v22 = vpop.permute.xlu1 %1010 }
  0xe4   : > { %v3064_v23 = vpop.permute.xlu0 %893  ;;  %v3066_v24 = vpop.permute.xlu1 %898 }
  0xe8   : > { %v3068_v25 = vpop.permute.xlu0 %1015  ;;  %v3070_v26 = vpop.permute.xlu1 %1020 }
  0xec   : > { %v3072_v27 = vpop.permute.xlu0 %903  ;;  %v3074_v28 = vpop.permute.xlu1 %908 }
  0xf0   : > { %v3076_v29 = vpop.permute.xlu0 %1025  ;;  %v3078_v30 = vpop.permute.xlu1 %1030 }
  0xf4   : > { %v3080_v31 = vpop.permute.xlu0 %913  ;;  %v3082_v32 = vpop.permute.xlu1 %918 }
  0xf8   : > { %v1098_v33 = vpop.permute.xlu0 %1097  ;;  %v1103_v34 = vpop.permute.xlu1 %1102 }
  0xfc   : > { %v1108_v35 = vpop.permute.xlu0 %1107  ;;  %v1113_v36 = vpop.permute.xlu1 %1112 }
 0x100   : > { %v3084_v37 = vpop.permute.xlu0 %1035  ;;  %v3086_v38 = vpop.permute.xlu1 %1040 }
 0x104   : > { %v3088_v41 = vpop.permute.xlu0 %923  ;;  %v3095_v44 = vpop.permute.xlu1 %928 }
 0x108   : > { %v1118_v50 = vpop.permute.xlu0 %1117  ;;  %v1123_v52 = vpop.permute.xlu1 %1122 }
 0x10c   : > { %v1128_v3 = vpop.permute.xlu0 %1127  ;;  %v1133_v5 = vpop.permute.xlu1 %1132 }
 0x136   : > { %v2268_v39 = vpop.f32.mrf.mxu0 }
 0x138   : > { %v2269_v40 = vpop.f32.mrf.mxu0 }
 0x139   : > { %v2270_v43 = vadd.f32 %v2269_v40, %v2268_v39 }
 0x13a   : > { %v2271_v45 = vpop.f32.mrf.mxu0 }
 0x13b   : > { %v793_v46 = vadd.f32 %v2270_v43, %v3093_v42  ;;  %v3104_v43 = vpop.permute.xlu1 %1050 }
 0x13c   : > { %v2272_v47 = vpop.f32.mrf.mxu0 }
 0x13d   : > { %v2273_v48 = vadd.f32 %v2272_v47, %v2271_v45  ;;  %v1063_v54 = vmul.f32 %v986_v13, %v793_v46  ;;  %v1175_v55 = vmul.f32 %v1098_v33, %v793_v46  ;;  %v951_v56 = vmul.f32 %v874_v14, %v793_v46  ;;  %v3102_v33 = vpop.permute.xlu0 %1045 }
 0x13e   : > { %v2274_v49 = vpop.f32.mrf.mxu0 }
 0x13f   : > { %v796_v51 = vadd.f32 %v2273_v48, %v3093_v42 }
 0x140   : > { %v2275_v53 = vpop.f32.mrf.mxu0 }
 0x141   : > { %v2276_v57 = vadd.f32 %v2275_v53, %v2274_v49  ;;  %v1064_v58 = vmul.f32 %v991_v15, %v796_v51  ;;  %v1176_v59 = vmul.f32 %v1103_v34, %v796_v51  ;;  %v952_v60 = vmul.f32 %v879_v16, %v796_v51  ;;  %v3110_v48 = vpop.permute.xlu0 %933 }
 0x142   : > { %v2277_v61 = vpop.f32.mrf.mxu0 }
 0x143   : > { %v1192_v62 = vpack.c.bf16 %v1064_v58, %v1063_v54  ;;  %v1193_v63 = vpack.c.bf16 %v1176_v59, %v1175_v55  ;;  %v1191_v0 = vpack.c.bf16 %v952_v60, %v951_v56  ;;  %v801_v1 = vadd.f32 %v2276_v57, %v3093_v42  ;;  %v3114_v55 = vpop.permute.xlu1 %938 }
 0x144   : > { %v2278_v2 = vpop.f32.mrf.mxu0 }
 0x145   : > { %v2279_v4 = vadd.f32 %v2278_v2, %v2277_v61  ;;  %1439 = vmatprep.mubr.bf16.mxu1 %v1192_v62  ;;  %2454 = vmatprep.mubr.bf16.mxu0 %v1193_v63  ;;  %v1177_v8 = vmul.f32 %v1108_v35, %v801_v1  ;;  %v1065_v10 = vmul.f32 %v996_v17, %v801_v1  ;;  %v1138_v61 = vpop.permute.xlu0 %1137 }
 0x146   : > { %v2280_v6 = vpop.f32.mrf.mxu0  ;;  %1440 = vmatmul.mubr.bf16.vlgmr.msra.gmra.mxu1 %v1191_v0  ;;  %v953_v11 = vmul.f32 %v884_v19, %v801_v1 }
 0x147   : > { %v804_v7 = vadd.f32 %v2279_v4, %v3093_v42 }
 0x148   : > { %v2281_v9 = vpop.f32.mrf.mxu0 }
 0x149   : > { %v1178_v12 = vmul.f32 %v1113_v36, %v804_v7  ;;  %v2282_v13 = vadd.f32 %v2281_v9, %v2280_v6  ;;  %v1066_v14 = vmul.f32 %v3058_v18, %v804_v7  ;;  %v954_v15 = vmul.f32 %v889_v20, %v804_v7 }
 0x14a   : > { %v2283_v16 = vpop.f32.mrf.mxu0 }
 0x14b   : > { %v1196_v34 = vpack.c.bf16 %v1178_v12, %v1177_v8  ;;  %v1195_v39 = vpack.c.bf16 %v1066_v14, %v1065_v10  ;;  %v1194_v40 = vpack.c.bf16 %v954_v15, %v953_v11  ;;  %v809_v45 = vadd.f32 %v2282_v13, %v3093_v42  ;;  %v1148_v13 = vpop.permute.xlu0 %1147 }
 0x14c   : > { %v2284_v46 = vpop.f32.mrf.mxu0 }
 0x14d   : > { %v2285_v35 = vadd.f32 %v2284_v46, %v2283_v16  ;;  %1447 = vmatprep.mubr.bf16.mxu1 %v1195_v39  ;;  %2455 = vmatmul.mubr.bf16.vlgmr.msra.gmra.mxu0 %v1196_v34  ;;  %v1067_v20 = vmul.f32 %v3060_v21, %v809_v45  ;;  %v1179_v36 = vmul.f32 %v1118_v50, %v809_v45 }
 0x14e   : > { %v2286_v17 = vpop.f32.mrf.mxu0  ;;  %1448 = vmatmul.mubr.bf16.gmra.mxu1 %v1194_v40  ;;  %v955_v47 = vmul.f32 %v3064_v23, %v809_v45 }
 0x14f   : > { %v812_v19 = vadd.f32 %v2285_v35, %v3093_v42  ;;  %v1056_v46 = vpop.permute.xlu0 %1055 }
 0x150   : > { %v2287_v18 = vpop.f32.mrf.mxu0 }
 0x151   : > { %v2288_v49 = vadd.f32 %v2287_v18, %v2286_v17  ;;  %v1068_v51 = vmul.f32 %v3062_v22, %v812_v19  ;;  %v1180_v53 = vmul.f32 %v1123_v52, %v812_v19  ;;  %v956_v54 = vmul.f32 %v3066_v24, %v812_v19  ;;  %v1143_v52 = vpop.permute.xlu1 %1142 }
 0x152   : > { %v2289_v56 = vpop.f32.mrf.mxu0 }
 0x153   : > { %v1198_v57 = vpack.c.bf16 %v1068_v51, %v1067_v20  ;;  %v1199_v58 = vpack.c.bf16 %v1180_v53, %v1179_v36  ;;  %v1197_v59 = vpack.c.bf16 %v956_v54, %v955_v47  ;;  %v817_v60 = vadd.f32 %v2288_v49, %v3093_v42  ;;  %v944_v53 = vpop.permute.xlu0 %943 }
 0x154   : > { %v2290_v21 = vpop.f32.mrf.mxu0 }
 0x155   : > { %v2291_v50 = vadd.f32 %v2290_v21, %v2289_v56  ;;  %1455 = vmatprep.mubr.bf16.mxu1 %v1198_v57  ;;  %2458 = vmatprep.mubr.bf16.mxu0 %v1199_v58  ;;  %v1069_v24 = vmul.f32 %v3068_v25, %v817_v60  ;;  %v1181_v63 = vmul.f32 %v1128_v3, %v817_v60  ;;  %v1153_v25 = vpop.permute.xlu1 %1152 }
 0x156   : > { %v2292_v23 = vpop.f32.mrf.mxu0  ;;  %1456 = vmatmul.mubr.bf16.gmra.mxu1 %v1197_v59  ;;  %v957_v0 = vmul.f32 %v3072_v27, %v817_v60 }
 0x157   : > { %v820_v22 = vadd.f32 %v2291_v50, %v3093_v42 }
 0x158   : > { %v2293_v62 = vpop.f32.mrf.mxu0 }
 0x159   : > { %v2294_v1 = vadd.f32 %v2293_v62, %v2292_v23  ;;  %v1070_v2 = vmul.f32 %v3070_v26, %v820_v22  ;;  %v1182_v4 = vmul.f32 %v1133_v5, %v820_v22  ;;  %v958_v6 = vmul.f32 %v3074_v28, %v820_v22  ;;  %v1061_v18 = vpop.permute.xlu1 %1060 }
 0x15a   : > { %v2295_v7 = vpop.f32.mrf.mxu0 }
 0x15b   : > { %v1201_v8 = vpack.c.bf16 %v1070_v2, %v1069_v24  ;;  %v1202_v9 = vpack.c.bf16 %v1182_v4, %v1181_v63  ;;  %v1200_v10 = vpack.c.bf16 %v958_v6, %v957_v0  ;;  %v825_v11 = vadd.f32 %v2294_v1, %v3093_v42 }
 0x15c   : > { %v2296_v12 = vpop.f32.mrf.mxu0 }
 0x15d   : > { %v2297_v14 = vadd.f32 %v2296_v12, %v2295_v7  ;;  %1463 = vmatprep.mubr.bf16.mxu1 %v1201_v8  ;;  %2459 = vmatmul.mubr.bf16.gmra.mxu0 %v1202_v9  ;;  %v1071_v5 = vmul.f32 %v3076_v29, %v825_v11  ;;  %v1183_v28 = vmul.f32 %v1138_v61, %v825_v11  ;;  %v949_v59 = vpop.permute.xlu1 %948 }
 0x15e   : > { %v2298_v3 = vpop.f32.mrf.mxu0  ;;  %1464 = vmatmul.mubr.bf16.gmra.mxu1 %v1200_v10  ;;  %v959_v15 = vmul.f32 %v3080_v31, %v825_v11 }
 0x15f   : > { %v828_v27 = vadd.f32 %v2297_v14, %v3093_v42 }
 0x160   : > { %v2299_v26 = vpop.f32.mrf.mxu0 }
 0x161   : > { %v2300_v16 = vadd.f32 %v2299_v26, %v2298_v3  ;;  %v1072_v34 = vmul.f32 %v3078_v30, %v828_v27  ;;  %v1184_v39 = vmul.f32 %v1143_v52, %v828_v27  ;;  %v960_v40 = vmul.f32 %v3082_v32, %v828_v27 }
 0x162   : > { %v2301_v45 = vpop.f32.mrf.mxu0 }
 0x163   : > { %v1204_v35 = vpack.c.bf16 %v1072_v34, %v1071_v5  ;;  %v1205_v17 = vpack.c.bf16 %v1184_v39, %v1183_v28  ;;  %v1203_v19 = vpack.c.bf16 %v960_v40, %v959_v15  ;;  %v833_v20 = vadd.f32 %v2300_v16, %v3093_v42 }
 0x164   : > { %v2302_v36 = vpop.f32.mrf.mxu0  ;;  %v2750_v16 = vmov 0.0  }
 0x165   : > { %v2303_v47 = vadd.f32 %v2302_v36, %v2301_v45  ;;  %1471 = vmatprep.mubr.bf16.mxu1 %v1204_v35  ;;  %2462 = vmatprep.mubr.bf16.mxu0 %v1205_v17  ;;  %v1073_v49 = vmul.f32 %v3084_v37, %v833_v20  ;;  %v1185_v32 = vmul.f32 %v1148_v13, %v833_v20 }
 0x166   : > { %v2304_v29 = vpop.f32.mrf.mxu0  ;;  %1472 = vmatmul.mubr.bf16.gmra.mxu1 %v1203_v19  ;;  %v961_v51 = vmul.f32 %v3088_v41, %v833_v20  ;;  %v1158_v41 = vpop.permute.xlu0 %1157  ;;  %2470 = vmatprep.subr.mxu1 %v2750_v16 }
 0x167   : > { %v836_v31 = vadd.f32 %v2303_v47, %v3093_v42 }
 0x168   : > { %v2305_v30 = vpop.f32.mrf.mxu0 }
 0x169   : > { %v2306_v54 = vadd.f32 %v2305_v30, %v2304_v29  ;;  %v1074_v56 = vmul.f32 %v3086_v38, %v836_v31  ;;  %v1186_v57 = vmul.f32 %v1153_v25, %v836_v31  ;;  %v962_v58 = vmul.f32 %v3095_v44, %v836_v31  ;;  %v1163_v38 = vpop.permute.xlu1 %1162 }
 0x16a   : > { %v2307_v60 = vpop.f32.mrf.mxu0 }
 0x16b   : > { %v1207_v21 = vpack.c.bf16 %v1074_v56, %v1073_v49  ;;  %v1208_v50 = vpack.c.bf16 %v1186_v57, %v1185_v32  ;;  %v1206_v23 = vpack.c.bf16 %v962_v58, %v961_v51  ;;  %v841_v61 = vadd.f32 %v2306_v54, %v3093_v42 }
 0x16c   : > { %v2308_v22 = vpop.f32.mrf.mxu0 }
 0x16d   : > { %v2309_v52 = vadd.f32 %v2308_v22, %v2307_v60  ;;  %1479 = vmatprep.mubr.bf16.mxu1 %v1207_v21  ;;  %2463 = vmatmul.mubr.bf16.gmra.mxu0 %v1208_v50  ;;  %v1075_v44 = vmul.f32 %v3102_v33, %v841_v61  ;;  %v1187_v63 = vmul.f32 %v1158_v41, %v841_v61  ;;  %v1168_v33 = vpop.permute.xlu0 %1167  ;;  %v1173_v14 = vpop.permute.xlu1 %1172 }
 0x16e   : > { %v2310_v37 = vpop.f32.mrf.mxu0  ;;  %1480 = vmatmul.mubr.bf16.gmra.mxu1 %v1206_v23  ;;  %v963_v0 = vmul.f32 %v3110_v48, %v841_v61 }
 0x16f   : > { %v844_v62 = vadd.f32 %v2309_v52, %v3093_v42 }
 0x170   : > { %v2311_v24 = vpop.f32.mrf.mxu0 }
 0x171   : > { %v2312_v1 = vadd.f32 %v2311_v24, %v2310_v37  ;;  %v1076_v2 = vmul.f32 %v3104_v43, %v844_v62  ;;  %v1188_v4 = vmul.f32 %v1163_v38, %v844_v62  ;;  %v964_v6 = vmul.f32 %v3114_v55, %v844_v62 }
 0x172   : > { %v2313_v7 = vpop.f32.mrf.mxu0 }
 0x173   : > { %v1210_v8 = vpack.c.bf16 %v1076_v2, %v1075_v44  ;;  %v1211_v9 = vpack.c.bf16 %v1188_v4, %v1187_v63  ;;  %v1209_v10 = vpack.c.bf16 %v964_v6, %v963_v0  ;;  %v849_v11 = vadd.f32 %v2312_v1, %v3093_v42 }
 0x174   : > { %v2314_v12 = vpop.f32.mrf.mxu0 }
 0x175   : > { %v2315_v13 = vadd.f32 %v2314_v12, %v2313_v7  ;;  %1487 = vmatprep.mubr.bf16.mxu1 %v1210_v8  ;;  %2466 = vmatprep.mubr.bf16.mxu0 %v1211_v9  ;;  %v1077_v25 = vmul.f32 %v1056_v46, %v849_v11  ;;  %v1189_v43 = vmul.f32 %v1168_v33, %v849_v11 }
 0x176   : > { %1488 = vmatmul.mubr.bf16.gmra.mxu1 %v1209_v10  ;;  %v965_v55 = vmul.f32 %v944_v53, %v849_v11 }
 0x177   : > { %v852_v48 = vadd.f32 %v2315_v13, %v3093_v42 }
 0x179   : > { %v1078_v3 = vmul.f32 %v1061_v18, %v852_v48  ;;  %v1190_v27 = vmul.f32 %v1173_v14, %v852_v48  ;;  %v966_v26 = vmul.f32 %v949_v59, %v852_v48 }
 0x17b   : > { %v1213_v5 = vpack.c.bf16 %v1078_v3, %v1077_v25  ;;  %v1214_v28 = vpack.c.bf16 %v1190_v27, %v1189_v43  ;;  %v1212_v15 = vpack.c.bf16 %v966_v26, %v965_v55 }
 0x17d   : > { %1495 = vmatprep.mubr.bf16.mxu1 %v1213_v5  ;;  %2467 = vmatmul.mubr.bf16.gmra.mxu0 %v1214_v28 }
 0x17e   : > { %1496 = vmatmul.mubr.bf16.gmra.mxu1 %v1212_v15 }
 0x17f   : > { %2502 = vmatprep.mubr.msk.f32.mxu1 %vm2751_vm0, %v2750_v16 }
 0x206   : > { %v2332_v42 = vpop.f32.mrf.mxu1 }
 0x208   : > { %v2333_v34 = vpop.f32.mrf.mxu1 }
 0x209   : > { %v3145_v39 = vadd.f32 %v2333_v34, %v2332_v42 }
 0x20a   : > { %v2335_v40 = vpop.f32.mrf.mxu1 }
 0x20c   : > { %v2336_v45 = vpop.f32.mrf.mxu1 }
 0x20d   : > { %v3147_v46 = vadd.f32 %v2336_v45, %v2335_v40  ;;  %v3151_v20 = vpop.f32.mrf.mxu0 }
 0x20e   : > { %v2338_v35 = vpop.f32.mrf.mxu1 }
 0x20f   : > { %v3155_v31 = vpop.f32.mrf.mxu0 }
 0x210   : > { %v2339_v17 = vpop.f32.mrf.mxu1 }
 0x211   : > { %v3149_v19 = vadd.f32 %v2339_v17, %v2338_v35  ;;  %v3161_v51 = vpop.f32.mrf.mxu0 }
 0x212   : > { %v2341_v18 = vpop.f32.mrf.mxu1 }
 0x213   : > { %v3165_v56 = vpop.f32.mrf.mxu0 }
 0x214   : > { %v2342_v36 = vpop.f32.mrf.mxu1 }
 0x215   : > { %v3153_v47 = vadd.f32 %v2342_v36, %v2341_v18 }
 0x216   : > { %v2344_v29 = vpop.f32.mrf.mxu1 }
 0x218   : > { %v2345_v30 = vpop.f32.mrf.mxu1 }
 0x219   : > { %v3157_v49 = vadd.f32 %v2345_v30, %v2344_v29 }
 0x21a   : > { %v3159_v32 = vpop.f32.mrf.mxu1 }
 0x21c   : > { %v3163_v53 = vpop.f32.mrf.mxu1 }
 0x21d   : > { %v3167_v58 = vpop.f32.mrf.mxu0  ;;  %v2349_v30 = vadd.f32 %v3163_v53, %v3159_v32  ;;  %v1550_v32 = vadd.f32 %v3161_v51, %v3153_v47  ;;  %v1547_v53 = vadd.f32 %v3151_v20, %v3149_v19  ;;  %v1542_v47 = vadd.f32 %v3147_v46, %v3165_v56 }
 0x21e   : > { %v2350_v54 = vpop.f32.mrf.mxu1  ;;  %v1539_v19 = vadd.f32 %v3145_v39, %v3155_v31  ;;  %v2752_v51 = vmov 1.0   ;;  %v1619_v39 = vld [vmem:[#allocation2 + $0x10] sm:$0xff] }
 0x21f   : > { %v3169_v21 = vpop.f32.mrf.mxu0 }
 0x220   : > { %v2351_v57 = vpop.f32.mrf.mxu1 }
 0x221   : > { %v2461_v61 = vpop.f32.mrf.mxu0  ;;  %v2352_v18 = vadd.f32 %v2351_v57, %v2350_v54  ;;  %v1555_v54 = vadd.f32 %v3157_v49, %v3169_v21  ;;  %v1601_v57 = vlaneseq  ;;  %v2231_v49 = vld [vmem:[%s3377_s18] ss:$0 sm:$0xff] }
 0x222   : > { %v2353_v59 = vpop.f32.mrf.mxu1  ;;  %v1620_v21 = vld [vmem:[#allocation2] sm:$0xff] }
 0x223   : > { %v1557_v37 = vpop.f32.mrf.mxu0 }
 0x224   : > { %v2354_v60 = vpop.f32.mrf.mxu1 }
 0x225   : > { %v2355_v45 = vadd.f32 %v2354_v60, %v2353_v59  ;;  %v1558_v59 = vadd.f32 %v2349_v30, %v1557_v37 }
 0x226   : > { %v2356_v50 = vpop.f32.mrf.mxu1 }
 0x227   : > { %v1566_v29 = vadd.f32 %v2461_v61, %v2355_v45 }
 0x228   : > { %v2357_v23 = vpop.f32.mrf.mxu1 }
 0x229   : > { %v2358_v35 = vadd.f32 %v2357_v23, %v2356_v50 }
 0x22a   : > { %v2359_v22 = vpop.f32.mrf.mxu1 }
 0x22c   : > { %v2360_v52 = vpop.f32.mrf.mxu1 }
 0x22d   : > { %v2464_v62 = vpop.f32.mrf.mxu0  ;;  %v2361_v34 = vadd.f32 %v2360_v52, %v2359_v22  ;;  %v1563_v22 = vadd.f32 %v3167_v58, %v2352_v18  ;;  %v3193_v58 = vshrl.u32 %v1601_v57, 7  ;;  %v1621_v52 = vld [vmem:[#allocation2 + $0x8] sm:$0xff] }
 0x22e   : > { %v2362_v41 = vpop.f32.mrf.mxu1 }
 0x22f   : > { %v1570_v44 = vpop.f32.mrf.mxu0  ;;  %vm1610_vm1 = vcmp.eq.s32.totalorder %v3193_v58, %v2231_v49  ;;  %v1603_v20 = vadd.s32 8, %v3193_v58  ;;  %v1604_v46 = vadd.s32 16, %v3193_v58 }
 0x230   : > { %v2363_v38 = vpop.f32.mrf.mxu1  ;;  %v1571_v36 = vadd.f32 %v2358_v35, %v1570_v44 }
 0x231   : > { %v2465_v1 = vpop.f32.mrf.mxu0  ;;  %v2364_v28 = vadd.f32 %v2363_v38, %v2362_v41  ;;  %vm1611_vm2 = vcmp.eq.s32.totalorder %v1603_v20, %v2231_v49  ;;  %vm1612_vm3 = vcmp.eq.s32.totalorder %v1604_v46, %v2231_v49 }
 0x232   : > { %v2365_v24 = vpop.f32.mrf.mxu1 }
 0x233   : > { %v1573_v6 = vpop.f32.mrf.mxu0  ;;  %v1579_v40 = vadd.f32 %v2464_v62, %v2364_v28 }
 0x234   : > { %v2366_v63 = vpop.f32.mrf.mxu1  ;;  %v1574_v17 = vadd.f32 %v2361_v34, %v1573_v6 }
 0x235   : > { %v2367_v55 = vadd.f32 %v2366_v63, %v2365_v24 }
 0x236   : > { %v2368_v0 = vpop.f32.mrf.mxu1 }
 0x237   : > { %v1582_v42 = vadd.f32 %v2465_v1, %v2367_v55 }
 0x238   : > { %v2369_v2 = vpop.f32.mrf.mxu1 }
 0x239   : > { %v2370_v26 = vadd.f32 %v2369_v2, %v2368_v0 }
 0x23a   : > { %v2371_v4 = vpop.f32.mrf.mxu1 }
 0x23c   : > { %v2372_v7 = vpop.f32.mrf.mxu1 }
 0x23d   : > { %v2468_v8 = vpop.f32.mrf.mxu0  ;;  %v2373_v3 = vadd.f32 %v2372_v7, %v2371_v4 }
 0x23e   : > { %v2374_v9 = vpop.f32.mrf.mxu1 }
 0x23f   : > { %v1586_v10 = vpop.f32.mrf.mxu0 }
 0x240   : > { %v2375_v11 = vpop.f32.mrf.mxu1  ;;  %v1587_v15 = vadd.f32 %v2370_v26, %v1586_v10 }
 0x241   : > { %v2469_v13 = vpop.f32.mrf.mxu0  ;;  %v2376_v48 = vadd.f32 %v2375_v11, %v2374_v9 }
 0x242   : > { %v2377_v12 = vpop.f32.mrf.mxu1 }
 0x243   : > { %v1589_v43 = vpop.f32.mrf.mxu0  ;;  %v1595_v27 = vadd.f32 %v2468_v8, %v2376_v48 }
 0x244   : > { %v2378_v33 = vpop.f32.mrf.mxu1  ;;  %v1590_v5 = vadd.f32 %v2373_v3, %v1589_v43 }
 0x245   : > { %v2379_v14 = vadd.f32 %v2378_v33, %v2377_v12 }
 0x247   : > { %v1598_v25 = vadd.f32 %v2469_v13, %v2379_v14 }
 0x249   : > { %2471 = vmatpush3.msra.mxu1 %v1598_v25 }
 0x24a   : > { %2472 = vmatprep.subr.mxu1 %v2750_v16 }
 0x24b   : > { %2473 = vmatpush3.msra.mxu1 %v1595_v27 }
 0x24c   : > { %2474 = vmatprep.subr.mxu1 %v2750_v16 }
 0x24d   : > { %2475 = vmatpush3.msra.mxu1 %v1590_v5 }
 0x24e   : > { %2476 = vmatprep.subr.mxu1 %v2750_v16 }
 0x24f   : > { %2477 = vmatpush3.msra.mxu1 %v1587_v15 }
 0x250   : > { %2478 = vmatprep.subr.mxu1 %v2750_v16 }
 0x251   : > { %2479 = vmatpush3.msra.mxu1 %v1582_v42 }
 0x252   : > { %2480 = vmatprep.subr.mxu1 %v2750_v16 }
 0x253   : > { %2481 = vmatpush3.msra.mxu1 %v1579_v40 }
 0x254   : > { %2482 = vmatprep.subr.mxu1 %v2750_v16 }
 0x255   : > { %2483 = vmatpush3.msra.mxu1 %v1574_v17 }
 0x256   : > { %2484 = vmatprep.subr.mxu1 %v2750_v16 }
 0x257   : > { %2485 = vmatpush3.msra.mxu1 %v1571_v36 }
 0x258   : > { %2486 = vmatprep.subr.mxu1 %v2750_v16 }
 0x259   : > { %2487 = vmatpush3.msra.mxu1 %v1566_v29 }
 0x25a   : > { %2488 = vmatprep.subr.mxu1 %v2750_v16 }
 0x25b   : > { %2489 = vmatpush3.msra.mxu1 %v1563_v22 }
 0x25c   : > { %2490 = vmatprep.subr.mxu1 %v2750_v16 }
 0x25d   : > { %2491 = vmatpush3.msra.mxu1 %v1558_v59 }
 0x25e   : > { %2492 = vmatprep.subr.mxu1 %v2750_v16 }
 0x25f   : > { %2493 = vmatpush3.msra.mxu1 %v1555_v54 }
 0x260   : > { %2494 = vmatprep.subr.mxu1 %v2750_v16 }
 0x261   : > { %2495 = vmatpush3.msra.mxu1 %v1550_v32 }
 0x262   : > { %2496 = vmatprep.subr.mxu1 %v2750_v16 }
 0x263   : > { %2497 = vmatpush3.msra.mxu1 %v1547_v53 }
 0x264   : > { %2498 = vmatprep.subr.mxu1 %v2750_v16 }
 0x265   : > { %2499 = vmatpush3.msra.mxu1 %v1542_v47 }
 0x266   : > { %2500 = vmatprep.subr.mxu1 %v2750_v16 }
 0x267   : > { %2501 = vmatpush3.msra.mxu1 %v1539_v19 }
 0x268   : > { %2503 = vmatmul.mubr.msk.f32.vlgmr.msra.gmra.mxu1 %vm1610_vm1, %v2752_v51 }
 0x269   : > { %2505 = vmatprep.mubr.msk.f32.mxu1 %vm2751_vm0, %v2750_v16 }
 0x26c   : > { %2506 = vmatmul.mubr.msk.f32.gmra.mxu1 %vm1611_vm2, %v2752_v51 }
 0x26d   : > { %2508 = vmatprep.mubr.msk.f32.mxu1 %vm2751_vm0, %v2750_v16 }
 0x270   : > { %2509 = vmatmul.mubr.msk.f32.gmra.mxu1 %vm1612_vm3, %v2752_v51 }
 0x328   : > { %v1688_v31 = vpop.f32.mrf.mxu1 }
 0x329   : > { %v1702_v56 = vadd.f32 %v1688_v31, %v1619_v39 }
 0x32a   : > { %v2504_v60 = vpop.f32.mrf.mxu1 }
 0x32b   : > { %1705 = vst [vmem:[#allocation2 + $0x10] sm:$0xff] %v1702_v56 }
 0x32c   : > { %v1693_v50 = vpop.f32.mrf.mxu1 }
 0x32d   : > { %v1703_v23 = vadd.f32 %v1693_v50, %v1620_v21 }
 0x32e   : > { %v2507_v61 = vpop.f32.mrf.mxu1 }
 0x32f   : > { %1706 = vst [vmem:[#allocation2] sm:$0xff] %v1703_v23  ;;  %1711 = sbr.rel (%p2238_p4) target bundleno = 2091 (0x82b), region = 146 }
 0x330   : > { %v1698_v37 = vpop.f32.mrf.mxu1 }
 0x331   : > { %v1704_v41 = vadd.f32 %v1698_v37, %v1621_v52 }
 0x332   : > { %v2510_v62 = vpop.f32.mrf.mxu1 }
 0x333   : > { %1707 = vst [vmem:[#allocation2 + $0x8] sm:$0xff] %v1704_v41 }
 0x334   : > { %v2239_v16 = vld [vmem:[#allocation9] ss:$0 sm:$0xff]  ;;  %v2753_v24 = vmov 0   ;;  %v2754_v44 = vmov 0.0   ;;  %v1745_v63 = vld [vmem:[%s3369_s12 + $0x70] sm:$0xff]  ;;  %v1829_v0 = vld [vmem:[%s3378_s17] sm:$0xff] }
 0x335   : > { %v1746_v38 = vld [vmem:[%s3369_s12 + $0x78] sm:$0xff]  ;;  %2644 = vset.pattern.permute.xlu0 %v2753_v24  ;;  %2511 = vmatprep.subr.mxu0 %v2754_v44  ;;  %v1744_v1 = vld [vmem:[%s3369_s12 + $0x68] sm:$0xff]  ;;  %vm2755_vm4 = vmmov 0   ;;  %v1743_v2 = vld [vmem:[%s3369_s12 + $0x60] sm:$0xff]  ;;  %v1828_v22 = vand.u32 127, %v1601_v57  ;;  %vm1879_vm10 = vcmask 64512  }
 0x336   : > { %1722 = vperm.xlu0 %2644, %v2239_v16   ;;  %2512 = vmatpush3.msra.mxu0 %v1746_v38  ;;  %v1742_v4 = vld [vmem:[%s3369_s12 + $0x58] sm:$0xff]  ;;  %v1741_v6 = vld [vmem:[%s3369_s12 + $0x50] sm:$0xff]  ;;  %v1740_v7 = vld [vmem:[%s3369_s12 + $0x48] sm:$0xff]  ;;  %vm1977_vm13 = vcmask 195584  }
 0x337   : > { %2513 = vmatprep.subr.mxu0 %v2754_v44  ;;  %2645 = vset.pattern.permute.xlu1 %v2753_v24  ;;  %v1739_v8 = vld [vmem:[%s3369_s12 + $0x40] sm:$0xff]  ;;  %v1738_v9 = vld [vmem:[%s3369_s12 + $0x38] sm:$0xff]  ;;  %v1737_v10 = vld [vmem:[%s3369_s12 + $0x30] sm:$0xff] }
 0x338   : > { %2514 = vmatpush3.msra.mxu0 %v1745_v63  ;;  %2543 = vmatprep.mubr.msk.f32.mxu0 %vm2755_vm4, %v2754_v44  ;;  %v1736_v11 = vld [vmem:[%s3369_s12 + $0x28] sm:$0xff]  ;;  %v1735_v12 = vld [vmem:[%s3369_s12 + $0x20] sm:$0xff]  ;;  %v1734_v33 = vld [vmem:[%s3369_s12 + $0x18] sm:$0xff] }
 0x339   : > { %2515 = vmatprep.subr.mxu0 %v2754_v44  ;;  %2552 = vmatprep.subr.mxu1 %v2754_v44  ;;  %v1830_v13 = vld [vmem:[%s3378_s17 + $0x8] sm:$0xff]  ;;  %v1831_v48 = vld [vmem:[%s3378_s17 + $0x10] sm:$0xff]  ;;  %v1731_v43 = vld [vmem:[%s3369_s12] sm:$0xff] }
 0x33a   : > { %1833 = vperm.xlu0 %2644, %v1829_v0   ;;  %2516 = vmatpush3.msra.mxu0 %v1744_v1  ;;  %v1733_v14 = vld [vmem:[%s3369_s12 + $0x10] sm:$0xff]  ;;  %v1732_v25 = vld [vmem:[%s3369_s12 + $0x8] sm:$0xff]  ;;  %v1713_v55 = vld [vmem:[#allocation2] sm:$0xff] }
 0x33b   : > { %2517 = vmatprep.subr.mxu0 %v2754_v44  ;;  %2558 = vmatprep.mubr.msk.f32.mxu1 %vm2755_vm4, %v2754_v44  ;;  %v1712_v3 = vld [vmem:[#allocation2 + $0x10] sm:$0xff]  ;;  %v1714_v28 = vld [vmem:[#allocation2 + $0x8] sm:$0xff] }
 0x33c   : > { %2518 = vmatpush3.msra.mxu0 %v1743_v2  ;;  %1836 = vperm.xlu1 %2645, %v1830_v13  }
 0x33d   : > { %2519 = vmatprep.subr.mxu0 %v2754_v44 }
 0x33e   : > { %2520 = vmatpush3.msra.mxu0 %v1742_v4 }
 0x33f   : > { %2521 = vmatprep.subr.mxu0 %v2754_v44 }
 0x340   : > { %2522 = vmatpush3.msra.mxu0 %v1741_v6  ;;  %1839 = vperm.xlu1 %2645, %v1831_v48  }
 0x341   : > { %2523 = vmatprep.subr.mxu0 %v2754_v44 }
 0x342   : > { %2524 = vmatpush3.msra.mxu0 %v1740_v7 }
 0x343   : > { %2525 = vmatprep.subr.mxu0 %v2754_v44 }
 0x344   : > { %2526 = vmatpush3.msra.mxu0 %v1739_v8 }
 0x345   : > { %2527 = vmatprep.subr.mxu0 %v2754_v44 }
 0x346   : > { %2528 = vmatpush3.msra.mxu0 %v1738_v9 }
 0x347   : > { %2529 = vmatprep.subr.mxu0 %v2754_v44 }
 0x348   : > { %2530 = vmatpush3.msra.mxu0 %v1737_v10 }
 0x349   : > { %2531 = vmatprep.subr.mxu0 %v2754_v44 }
 0x34a   : > { %2532 = vmatpush3.msra.mxu0 %v1736_v11 }
 0x34b   : > { %2533 = vmatprep.subr.mxu0 %v2754_v44 }
 0x34c   : > { %2534 = vmatpush3.msra.mxu0 %v1735_v12 }
 0x34d   : > { %2535 = vmatprep.subr.mxu0 %v2754_v44 }
 0x34e   : > { %2536 = vmatpush3.msra.mxu0 %v1734_v33 }
 0x34f   : > { %2537 = vmatprep.subr.mxu0 %v2754_v44 }
 0x350   : > { %2538 = vmatpush3.msra.mxu0 %v1733_v14 }
 0x351   : > { %2539 = vmatprep.subr.mxu0 %v2754_v44 }
 0x352   : > { %2540 = vmatpush3.msra.mxu0 %v1732_v25 }
 0x353   : > { %2541 = vmatprep.subr.mxu0 %v2754_v44 }
 0x354   : > { %2542 = vmatpush3.msra.mxu0 %v1731_v43 }
 0x3b1   : > { %v1723_v27 = vpop.permute.xlu0 %1722 }
 0x3b2   : > { %v1725_v26 = vadd.f32 %v1723_v27, %v1712_v3  ;;  %v1726_v5 = vadd.f32 %v1723_v27, %v1713_v55  ;;  %v1727_v15 = vadd.f32 %v1723_v27, %v1714_v28 }
 0x3b4   : > { %2646 = vtanh.f32 %v1725_v26 }
 0x3b5   : > { %2648 = vtanh.f32 %v1726_v5  ;;  %v1834_v59 = vpop.permute.xlu0 %1833 }
 0x3b6   : > { %2650 = vtanh.f32 %v1727_v15  ;;  %vm1841_vm5 = vcmp.eq.s32.totalorder %v1828_v22, %v1834_v59 }
 0x3b7   : > { %v1837_v30 = vpop.permute.xlu1 %1836  ;;  %v3308_v32 = vsel %vm1841_vm5, 1.0, %v2754_v44 }
 0x3b8   : > { %vm1842_vm6 = vcmp.eq.s32.totalorder %v1828_v22, %v1837_v30  ;;  %vm1858_vm8 = vcmp.gt.f32.partialorder %v3308_v32, 0.0 }
 0x3b9   : > { %v3311_v53 = vsel %vm1842_vm6, 1.0, %v2754_v44 }
 0x3ba   : > { %vm1859_vm9 = vcmp.gt.f32.partialorder %v3311_v53, 0.0 }
 0x3bb   : > { %v1840_v54 = vpop.permute.xlu1 %1839 }
 0x3bc   : > { %vm1843_vm7 = vcmp.eq.s32.totalorder %v1828_v22, %v1840_v54 }
 0x3bd   : > { %v2242_v19 = vsel %vm1843_vm7, 1.0, %v2754_v44 }
 0x3be   : > { %vm1860_vm11 = vcmp.gt.f32.partialorder %v2242_v19, 0.0 }
 0x3c1   : > { %v3293_v42 = vpop.eup %2646 }
 0x3c2   : > { %2544 = vmatmul.mubr.f32.vlgmr.msra.gmra.mxu0 %v3293_v42  ;;  %v3298_v34 = vpop.eup %2648 }
 0x3c3   : > { %2546 = vmatprep.mubr.msk.f32.mxu0 %vm2755_vm4, %v2754_v44  ;;  %v3303_v40 = vpop.eup %2650 }
 0x3c6   : > { %2547 = vmatmul.mubr.f32.gmra.mxu0 %v3298_v34 }
 0x3c7   : > { %2549 = vmatprep.mubr.msk.f32.mxu0 %vm2755_vm4, %v2754_v44 }
 0x3ca   : > { %2550 = vmatmul.mubr.f32.gmra.mxu0 %v3303_v40 }
 0x482   : > { %v1813_v45 = vpop.f32.mrf.mxu0 }
 0x483   : > { %1863 = vperm.xlu0 %2644, %v1813_v45  }
 0x484   : > { %v2545_v35 = vpop.f32.mrf.mxu0 }
 0x486   : > { %v1818_v17 = vpop.f32.mrf.mxu0 }
 0x487   : > { %1868 = vperm.xlu1 %2645, %v1818_v17  }
 0x488   : > { %v2548_v18 = vpop.f32.mrf.mxu0 }
 0x48a   : > { %v1823_v36 = vpop.f32.mrf.mxu0 }
 0x48b   : > { %1873 = vperm.xlu0 %2644, %v1823_v36  }
 0x48c   : > { %v2551_v29 = vpop.f32.mrf.mxu0 }
 0x4fe   : > { %v1864_v49 = vpop.permute.xlu0 %1863 }
 0x4ff   : > { %v1876_v57 = vsel %vm1858_vm8, %v1864_v49, -1e+30 }
 0x500   : > { %v1880_v46 = vsel %vm1879_vm10, %v1876_v57, -inf }
 0x502   : > { %v1869_v47 = vpop.permute.xlu1 %1868 }
 0x503   : > { %v1877_v20 = vsel %vm1859_vm9, %v1869_v47, -1e+30 }
 0x504   : > { %v1881_v51 = vsel %vm1879_vm10, %v1877_v20, -inf }
 0x505   : > { %v1883_v31 = vmax.f32 %v1880_v46, %v1881_v51 }
 0x506   : > { %v1874_v39 = vpop.permute.xlu0 %1873 }
 0x507   : > { %v1878_v56 = vsel %vm1860_vm11, %v1874_v39, -1e+30 }
 0x508   : > { %v1882_v60 = vsel %vm1879_vm10, %v1878_v56, -inf }
 0x509   : > { %v1884_v21 = vmax.f32 %v1883_v31, %v1882_v60 }
 0x50b   : > { %v1885_v50 = vrot.slane %v1884_v21, 4 }
 0x50d   : > { %v1886_v23 = vmax.f32 %v1884_v21, %v1885_v50 }
 0x50f   : > { %v1887_v61 = vrot.slane %v1886_v23, 2 }
 0x511   : > { %v1888_v52 = vmax.f32 %v1886_v23, %v1887_v61 }
 0x513   : > { %v1889_v37 = vrot.slane %v1888_v52, 1 }
 0x515   : > { %v1890_v41 = vmax.f32 %v1888_v52, %v1889_v37 }
 0x517   : > { %v1892_v62 = vmul.f32 %v3311_v53, %v1890_v41  ;;  %v1891_v16 = vmul.f32 %v3308_v32, %v1890_v41  ;;  %v1893_v63 = vmul.f32 %v2242_v19, %v1890_v41 }
 0x519   : > { %v1897_v38 = vsel %vm1879_vm10, %v1892_v62, 0.0  ;;  %v1894_v24 = vsel %vm1879_vm10, %v1891_v16, 0.0  ;;  %v1900_v0 = vsel %vm1879_vm10, %v1893_v63, 0.0 }
 0x51a   : > { %1898 = vadd.xlane.f32.xlu0 %v1897_v38  ;;  %1895 = vadd.xlane.f32.xlu1 %v1894_v24 }
 0x51e   : > { %1901 = vadd.xlane.f32.xlu0 %v1900_v0 }
 0x5a3   : > { %v1899_v1 = vpop.xlane.xlu0 %1898  ;;  %v1896_v2 = vpop.xlane.xlu1 %1895 }
 0x5a4   : > { %v1904_v4 = vsub.f32 %v1818_v17, %v1899_v1  ;;  %v1903_v6 = vsub.f32 %v1813_v45, %v1896_v2 }
 0x5a6   : > { %v1908_v7 = vmul.f32 1.442695, %v1904_v4  ;;  %v1906_v8 = vmul.f32 1.442695, %v1903_v6 }
 0x5a7   : > { %v1902_v9 = vpop.xlane.xlu0 %1901 }
 0x5a8   : > { %2652 = vpow2.f32 %v1908_v7  ;;  %v1905_v10 = vsub.f32 %v1823_v36, %v1902_v9 }
 0x5a9   : > { %2654 = vpow2.f32 %v1906_v8 }
 0x5aa   : > { %v1910_v11 = vmul.f32 1.442695, %v1905_v10 }
 0x5ac   : > { %2656 = vpow2.f32 %v1910_v11 }
 0x5b5   : > { %v2653_v12 = vpop.eup %2652 }
 0x5b6   : > { %v2655_v13 = vpop.eup %2654  ;;  %1919 = vperm.xlu0 %2644, %v2653_v12  }
 0x5b7   : > { %1914 = vperm.xlu1 %2645, %v2655_v13  }
 0x5b9   : > { %v2657_v33 = vpop.eup %2656 }
 0x5bb   : > { %1924 = vperm.xlu1 %2645, %v2657_v33  }
 0x631   : > { %v1920_v48 = vpop.permute.xlu0 %1919 }
 0x632   : > { %v1928_v14 = vmul.f32 %v3311_v53, %v1920_v48  ;;  %v1915_v25 = vpop.permute.xlu1 %1914 }
 0x633   : > { %v1927_v43 = vmul.f32 %v3308_v32, %v1915_v25 }
 0x634   : > { %v1931_v3 = vsel %vm1879_vm10, %v1928_v14, 0.0 }
 0x635   : > { %v1930_v27 = vsel %vm1879_vm10, %v1927_v43, 0.0 }
 0x636   : > { %v1925_v55 = vpop.permute.xlu1 %1924  ;;  %v1932_v5 = vadd.f32 %v1931_v3, %v1930_v27 }
 0x637   : > { %v1929_v26 = vmul.f32 %v2242_v19, %v1925_v55 }
 0x639   : > { %v1933_v28 = vsel %vm1879_vm10, %v1929_v26, 0.0 }
 0x63a   : > { %v1934_v15 = vadd.f32 %v1933_v28, %v1932_v5 }
 0x63c   : > { %v1935_v45 = vrot.slane %v1934_v15, 4 }
 0x63e   : > { %v1936_v35 = vadd.f32 %v1935_v45, %v1934_v15 }
 0x640   : > { %v1937_v17 = vrot.slane %v1936_v35, 2 }
 0x642   : > { %v1938_v18 = vadd.f32 %v1937_v17, %v1936_v35 }
 0x644   : > { %v1939_v36 = vrot.slane %v1938_v18, 1 }
 0x646   : > { %v1940_v29 = vadd.f32 %v1939_v36, %v1938_v18 }
 0x648   : > { %v1943_v30 = vmul.f32 %v2242_v19, %v1940_v29  ;;  %v1942_v22 = vmul.f32 %v3311_v53, %v1940_v29  ;;  %v1941_v49 = vmul.f32 %v3308_v32, %v1940_v29  ;;  %v2243_v32 = vld [vmem:[%s3371_s14] ss:$0 sm:$0xff] }
 0x649   : > { %vm1855_vm12 = vcmp.eq.s32.totalorder %v3193_v58, %v2243_v32 }
 0x64a   : > { %v1950_v59 = vsel %vm1879_vm10, %v1943_v30, 0.0  ;;  %v1947_v54 = vsel %vm1879_vm10, %v1942_v22, 0.0  ;;  %v1944_v47 = vsel %vm1879_vm10, %v1941_v49, 0.0  ;;  %v2244_v37 = vsel %vm1855_vm12, 1.0, %v2754_v44 }
 0x64b   : > { %1951 = vadd.xlane.f32.xlu1 %v1950_v59  ;;  %1948 = vadd.xlane.f32.xlu0 %v1947_v54 }
 0x64f   : > { %1945 = vadd.xlane.f32.xlu0 %v1944_v47 }
 0x6d4   : > { %v1952_v57 = vpop.xlane.xlu1 %1951  ;;  %v1949_v20 = vpop.xlane.xlu0 %1948 }
 0x6d5   : > { %2658 = vrcp.f32 %v1952_v57 }
 0x6d6   : > { %2660 = vrcp.f32 %v1949_v20 }
 0x6d8   : > { %v1946_v51 = vpop.xlane.xlu0 %1945 }
 0x6d9   : > { %2662 = vrcp.f32 %v1946_v51 }
 0x6e2   : > { %v2659_v19 = vpop.eup %2658 }
 0x6e3   : > { %v2661_v46 = vpop.eup %2660  ;;  %v1958_v53 = vmul.f32 %v2659_v19, %v2657_v33 }
 0x6e4   : > { %v1956_v39 = vmul.f32 %v2661_v46, %v2653_v12 }
 0x6e5   : > { %1971 = vperm.xlu1 %2645, %v1958_v53  }
 0x6e6   : > { %v2663_v31 = vpop.eup %2662  ;;  %1966 = vperm.xlu0 %2644, %v1956_v39  }
 0x6e7   : > { %v1954_v56 = vmul.f32 %v2663_v31, %v2655_v13 }
 0x6e9   : > { %1961 = vperm.xlu1 %2645, %v1954_v56  }
 0x760   : > { %v1972_v60 = vpop.permute.xlu1 %1971 }
 0x761   : > { %v1976_v21 = vmul.f32 %v3303_v40, %v1972_v60  ;;  %v1967_v50 = vpop.permute.xlu0 %1966 }
 0x762   : > { %v1975_v23 = vmul.f32 %v3298_v34, %v1967_v50 }
 0x763   : > { %2553 = vmatpush3.msra.mxu1 %v1976_v21 }
 0x764   : > { %2554 = vmatprep.subr.mxu1 %v2754_v44  ;;  %v1962_v61 = vpop.permute.xlu1 %1961 }
 0x765   : > { %v1974_v52 = vmul.f32 %v3293_v42, %v1962_v61  ;;  %2555 = vmatpush3.msra.mxu1 %v1975_v23 }
 0x766   : > { %2556 = vmatprep.subr.mxu1 %v2754_v44 }
 0x767   : > { %2557 = vmatpush3.msra.mxu1 %v1974_v52 }
 0x768   : > { %2559 = vmatmul.mubr.msk.f32.vlgmr.msra.gmra.mxu1 %vm1977_vm13, %v2244_v37 }
 0x828   : > { %v2047_v40 = vpop.f32.mrf.mxu1 }
 0x829   : > { %2051 = vst [vmem:[#allocation10] sm:$0xff] %v2047_v40 }
 0x82a   : > { %v2560_v41 = vpop.f32.mrf.mxu1 }
 0x82b PF: > { %p2565_p5 = scmp.eq.s32.totalorder %s2852_s13, 1  ;;  %s2756_s16 = smov [#allocation10]  }
 0x82c   : > { %s2059_s19 = sshll.u32 %s2756_s16, 4  ;;  %s2060_s19 = int_to_ptr.vmem [resolvable:$true] %s2059_s19 }
 0x82d   : > { %s2688_s20 = scalar_lea.vmem %s2060_s19, 128  ;;  %p2695_p9 = scmp.lt.s32.totalorder %s2060_s19, %s2060_s19 }
 0x82e   : > { %p2689_p6 = scmp.ne.s32.totalorder %s2060_s19, %s2688_s20  ;;  %p2696_p10 = scmp.lt.s32.totalorder %s2688_s20, %s2688_s20 }
 0x830   : > { %p2690_p7 = pnand %p2689_p6, %p2565_p5  ;;  %p2697_p11 = por %p2696_p10, %p2695_p9 }
 0x832   : > { %p2691_p8 = pneg %p2690_p7 }
 0x834   : > { %p2698_p12 = pnand %p2697_p11, %p2691_p8 }
 0x836   : > { %2701 = shalt.err (!%p2698_p12)
}
 0x837   : > { %2562 = dma.vmem_to_hbm [thread:$0]  (%p2565_p5), %s2060_s19, 128, %s3372_s15, [#allocation11]  }
 0x838   : > { %2731 = dma.done.wait (%p2565_p5), [#allocation11], 128  }
 0x839   : > { %2733 = vsyncadd (%p2565_p5), [#allocation11], 4294967168 }
 0x83a PF: > { %s38_s11 = sadd.s32 1, %s2736_s11  }
 0x83b   : > { %p35_p13 = scmp.ge.s32.totalorder %s38_s11, 4  }
 0x83d   :  { %37 = sbr.rel (!%p35_p13) target bundleno = 27 (0x1b), region = 231 }
 0x842   :  { %2072 = vsyncpa [#allocation11], 1 }
 0x843   :  { %2074 = vsyncpa [#allocation11 + $0x1], 1 }
 0x844   :  { %2075 = vsyncmov [#allocation5] }
 0x847   :  { %s2076_s25 = vpop.sfrf %2075 }
 0x848   :  { %p2250_p0 = scmp.ne.s32.totalorder %s2076_s25, 0 }
 0x84a   :  { %2080 = shalt.err (%p2250_p0)  }
 0x84b   :  { %2082 = vsyncmov [#allocation5 + $0x1] }
 0x84e   :  { %s2083_s24 = vpop.sfrf %2082 }
 0x84f   :  { %p2251_p1 = scmp.ne.s32.totalorder %s2083_s24, 0 }
 0x851   :  { %2087 = shalt.err (%p2251_p1)  }

</bundles_post_ra>
